<compile_context>
chip_gen: v5e
topology: v5e:2x2
jax: 0.10.0
libtpu: 0.0.40
codegen_flags: <defaults>
</compile_context>

<pallas_src>
import functools

import jax
import jax.numpy as jnp
from jax.experimental import pallas as pl
from jax.experimental.pallas import tpu as pltpu


def _round_up(x, m):
    return (x + m - 1) // m * m


def _pick_tile(target, b_pad):
    """Largest multiple of 128 <= target that divides b_pad (b_pad % 128 == 0)."""
    t = min(int(target), b_pad)
    t = max((t // 128) * 128, 128)
    while t > 128 and b_pad % t != 0:
        t -= 128
    return t


def _device_tiling():
    """Per-generation (tq_target, tk_target, vmem_cap_bytes)."""
    try:
        kind = jax.devices()[0].device_kind.lower()
    except Exception:  # pragma: no cover - defensive
        kind = ""
    if "v7" in kind:
        return 512, 256, 48 << 20       # 64 MiB physical VMEM -> stay well under
    if "v6" in kind:
        return 1024, 256, 96 << 20      # ridge ~656 flops/byte, 128 MiB VMEM
    if "v5 lite" in kind or "v5e" in kind or "v5lite" in kind:
        return 512, 128, 64 << 20       # native 128x128 MXU, small scoped default
    return 512, 256, 48 << 20           # safe everywhere


# ---------------------------------------------------------------------------
# InfoNCE kernel: online logsumexp over key tiles.
#   q_ref is pre-normalized AND pre-scaled by 1/temperature (wrapper);
#   k_ref is pre-normalized.  sim therefore already includes the temperature.
# ---------------------------------------------------------------------------
def _infonce_kernel(q_ref, k_ref, lab_q_ref, lab_k_ref, out_ref,
                    m_sc, l_sc, spos_sc, npos_sc, *, b_real, tq, tk):
    qi = pl.program_id(0)
    ki = pl.program_id(1)

    @pl.when(ki == 0)
    def _init():
        m_sc[...] = jnp.full(m_sc.shape, -1e30, jnp.float32)
        l_sc[...] = jnp.zeros(l_sc.shape, jnp.float32)
        spos_sc[...] = jnp.zeros(spos_sc.shape, jnp.float32)
        npos_sc[...] = jnp.zeros(npos_sc.shape, jnp.float32)

    sim = jax.lax.dot_general(
        q_ref[...], k_ref[...], (((1,), (1,)), ((), ())),
        preferred_element_type=jnp.float32)                          # (tq, tk)

    col = ki * tk + jax.lax.broadcasted_iota(jnp.int32, (tq, tk), 1)
    row = qi * tq + jax.lax.broadcasted_iota(jnp.int32, (tq, tk), 0)
    col_ok = col < b_real
    # positive mask = same label, valid column, not the diagonal (matches
    # reference's `positive_mask - eye`).
    pos = jnp.logical_and(jnp.logical_and(lab_q_ref[...] == lab_k_ref[...], col_ok),
                          row != col).astype(jnp.float32)

    # online logsumexp over valid key columns (flash-style)
    tile_max = jnp.max(jnp.where(col_ok, sim, -1e30), axis=1, keepdims=True)
    m_new = jnp.maximum(m_sc[...], tile_max)
    p = jnp.where(col_ok, jnp.exp(sim - m_new), 0.0)
    l_sc[...] = l_sc[...] * jnp.exp(m_sc[...] - m_new) + jnp.sum(p, axis=1, keepdims=True)
    m_sc[...] = m_new

    spos_sc[...] += jnp.sum(pos * sim, axis=1, keepdims=True)
    npos_sc[...] += jnp.sum(pos, axis=1, keepdims=True)

    @pl.when(ki == pl.num_programs(1) - 1)
    def _finalize():
        r = qi * tq + jax.lax.broadcasted_iota(jnp.int32, (tq, 1), 0)
        row_valid = (r < b_real).astype(jnp.float32)
        log_z = m_sc[...] + jnp.log(l_sc[...])           # log sum_j exp(sim_ij)
        n_pos = npos_sc[...]
        pos_log_prob = spos_sc[...] - n_pos * log_z
        loss_row = -pos_log_prob / jnp.maximum(n_pos, 1.0)
        out_ref[...] = loss_row * row_valid


# ---------------------------------------------------------------------------
# Triplet kernel: running row-min of masked *squared* distances over key
# tiles; sqrt only on the (tq,1) results at finalize.
# ---------------------------------------------------------------------------
def _triplet_kernel(q_ref, k_ref, lab_q_ref, lab_k_ref, sq_q_ref, sq_k_ref, out_ref,
                    hp2_sc, hn2_sc, nn_sc, *, margin, b_real, tq, tk):
    qi = pl.program_id(0)
    ki = pl.program_id(1)
    BIG = 1e12   # sqrt(1e12) == 1e6, the reference's "no positive" filler

    @pl.when(ki == 0)
    def _init():
        hp2_sc[...] = jnp.full(hp2_sc.shape, BIG, jnp.float32)
        hn2_sc[...] = jnp.full(hn2_sc.shape, BIG, jnp.float32)
        nn_sc[...] = jnp.zeros(nn_sc.shape, jnp.float32)

    g = jax.lax.dot_general(
        q_ref[...], k_ref[...], (((1,), (1,)), ((), ())),
        preferred_element_type=jnp.float32)                          # (tq, tk)
    d2 = jnp.maximum(sq_q_ref[...] + sq_k_ref[...] - 2.0 * g, 0.0)

    col = ki * tk + jax.lax.broadcasted_iota(jnp.int32, (tq, tk), 1)
    row = qi * tq + jax.lax.broadcasted_iota(jnp.int32, (tq, tk), 0)
    col_ok = col < b_real
    same_lab = lab_q_ref[...] == lab_k_ref[...]
    same_ok = jnp.logical_and(same_lab, col_ok)           # includes the diagonal
    pos = jnp.logical_and(same_ok, row != col)
    neg = jnp.logical_and(jnp.logical_not(same_lab), col_ok)

    hp2_sc[...] = jnp.minimum(
        hp2_sc[...], jnp.min(jnp.where(pos, d2, BIG), axis=1, keepdims=True))
    hn2_sc[...] = jnp.minimum(
        hn2_sc[...], jnp.min(jnp.where(neg, d2, BIG), axis=1, keepdims=True))
    nn_sc[...] = jnp.maximum(
        nn_sc[...], jnp.max(same_ok.astype(jnp.float32), axis=1, keepdims=True))

    @pl.when(ki == pl.num_programs(1) - 1)
    def _finalize():
        r = qi * tq + jax.lax.broadcasted_iota(jnp.int32, (tq, 1), 0)
        row_valid = (r < b_real).astype(jnp.float32)
        # reference: positives -> dist, everything else -> 1e6
        hp = jnp.sqrt(hp2_sc[...])
        # reference: negatives -> dist + 1e6, non-negatives -> 0.  Any row with
        # a non-negative entry (always: the diagonal) has hardest_negative == 0.
        hn = jnp.where(nn_sc[...] > 0.0, 0.0, jnp.sqrt(hn2_sc[...]) + 1e6)
        trip = jnp.maximum(hp - hn + margin, 0.0)
        out_ref[...] = trip * row_valid


# ---------------------------------------------------------------------------
# Wrapper
# ---------------------------------------------------------------------------
def contrastive_loss(embeddings, labels, mode="infonce",
                     temperature=0.07, margin=1.0,
                     compute_dtype=None, tile_q=None, tile_k=None):
    """embeddings: [B, D] float; labels: [B] int. Returns the scalar loss."""
    B, D = embeddings.shape
    if compute_dtype is None:
        # bf16 MXU operands for f32 inputs (fast path); keep bf16 inputs as-is.
        compute_dtype = (jnp.bfloat16
                         if jnp.dtype(embeddings.dtype) == jnp.dtype(jnp.float32)
                         else embeddings.dtype)
    c_isz = jnp.dtype(compute_dtype).itemsize

    D_pad = max(128, _round_up(D, 128))
    B_pad = max(128, _round_up(B, 128))

    tq_target, tk_target, vmem_cap = _device_tiling()
    tq = tile_q if tile_q is not None else _pick_tile(tq_target, B_pad)
    tk = tile_k if tile_k is not None else _pick_tile(tk_target, B_pad)

    def _est_vmem(tq_, tk_):
        io = 2 * (tq_ + tk_) * D_pad * c_isz         # double-buffered emb tiles
        aux = 10 * tq_ * 512 + (256 << 10)           # labels/sq/scratch/out padding
        return io + aux + (2 << 20)

    if tile_q is None:
        while _est_vmem(tq, tk) > vmem_cap - (8 << 20) and tq > 128:
            tq = _pick_tile(tq - 128, B_pad)
    vmem_limit = int(min(max(_est_vmem(tq, tk) + (8 << 20), 32 << 20), vmem_cap))

    n_q = B_pad // tq
    n_k = B_pad // tk

    emb_f32 = embeddings.astype(jnp.float32)
    lab = labels.astype(jnp.int32)
    lab_col = jnp.full((B_pad, 1), -1, jnp.int32).at[:B, 0].set(lab)
    lab_row = jnp.full((1, B_pad), -1, jnp.int32).at[0, :B].set(lab)

    emb_q_spec = pl.BlockSpec((tq, D_pad), lambda q, k: (q, 0))
    emb_k_spec = pl.BlockSpec((tk, D_pad), lambda q, k: (k, 0))
    lab_q_spec = pl.BlockSpec((tq, 1), lambda q, k: (q, 0))
    lab_k_spec = pl.BlockSpec((1, tk), lambda q, k: (0, k))
    out_spec = pl.BlockSpec((tq, 1), lambda q, k: (q, 0))

    cost = pl.CostEstimate(
        flops=2 * B_pad * B_pad * D_pad,
        transcendentals=B_pad * B_pad,
        bytes_accessed=(1 + n_q) * B_pad * D_pad * c_isz + 16 * B_pad,
    )
    cparams = pltpu.CompilerParams(
        dimension_semantics=("parallel", "arbitrary"),
        vmem_limit_bytes=vmem_limit)

    if mode == "infonce":
        # F.normalize(dim=1, eps=1e-12) once, in f32; fold 1/temperature into q.
        norm = jnp.sqrt(jnp.sum(emb_f32 * emb_f32, axis=1, keepdims=True))
        emb_n = emb_f32 / jnp.maximum(norm, 1e-12)
        q_mat = jnp.zeros((B_pad, D_pad), compute_dtype).at[:B, :D].set(
            (emb_n * (1.0 / temperature)).astype(compute_dtype))
        k_mat = jnp.zeros((B_pad, D_pad), compute_dtype).at[:B, :D].set(
            emb_n.astype(compute_dtype))
        kern = functools.partial(_infonce_kernel, b_real=B, tq=tq, tk=tk)
        grid_spec = pltpu.PrefetchScalarGridSpec(
            num_scalar_prefetch=0, grid=(n_q, n_k),
            in_specs=[emb_q_spec, emb_k_spec, lab_q_spec, lab_k_spec],
            out_specs=out_spec,
            scratch_shapes=[pltpu.VMEM((tq, 1), jnp.float32) for _ in range(4)])
        inputs = (q_mat, k_mat, lab_col, lab_row)
    elif mode == "triplet":
        emb_c = emb_f32.astype(compute_dtype)
        e_mat = jnp.zeros((B_pad, D_pad), compute_dtype).at[:B, :D].set(emb_c)
        sq = jnp.sum(emb_c.astype(jnp.float32) ** 2, axis=1)
        sq_col = jnp.zeros((B_pad, 1), jnp.float32).at[:B, 0].set(sq)
        sq_row = jnp.zeros((1, B_pad), jnp.float32).at[0, :B].set(sq)
        kern = functools.partial(_triplet_kernel, margin=margin, b_real=B, tq=tq, tk=tk)
        grid_spec = pltpu.PrefetchScalarGridSpec(
            num_scalar_prefetch=0, grid=(n_q, n_k),
            in_specs=[emb_q_spec, emb_k_spec, lab_q_spec, lab_k_spec,
                      pl.BlockSpec((tq, 1), lambda q, k: (q, 0)),
                      pl.BlockSpec((1, tk), lambda q, k: (0, k))],
            out_specs=out_spec,
            scratch_shapes=[pltpu.VMEM((tq, 1), jnp.float32) for _ in range(3)])
        inputs = (e_mat, e_mat, lab_col, lab_row, sq_col, sq_row)
    else:
        raise ValueError(f"Unknown contrastive mode: {mode}")

    row_losses = pl.pallas_call(
        kern,
        out_shape=jax.ShapeDtypeStruct((B_pad, 1), jnp.float32),
        grid_spec=grid_spec,
        compiler_params=cparams,
        cost_estimate=cost,
    )(*inputs)

    # Final tiny mean over valid rows is a plain XLA reduce.
    return jnp.sum(row_losses) / B


# ----------------------- pure-JAX references (for checking) -----------------
def _ref_infonce(e, labels, temperature):
    e = e.astype(jnp.float32)
    B = e.shape[0]
    e_n = e / jnp.maximum(jnp.linalg.norm(e, axis=1, keepdims=True), 1e-12)
    sim = (e_n @ e_n.T) / temperature
    same = (labels[:, None] == labels[None, :]).astype(jnp.float32)
    pos = same - jnp.eye(B, dtype=jnp.float32)
    log_prob = sim - jnp.log(jnp.sum(jnp.exp(sim), axis=1, keepdims=True))
    plp = jnp.sum(pos * log_prob, axis=1)
    npos = jnp.maximum(jnp.sum(pos, axis=1), 1.0)
    return -jnp.mean(plp / npos)


def _ref_triplet(e, labels, margin):
    e = e.astype(jnp.float32)
    B = e.shape[0]
    sq = jnp.sum(e * e, axis=1)
    d2 = sq[:, None] + sq[None, :] - 2.0 * (e @ e.T)
    dist = jnp.sqrt(jnp.maximum(d2, 0.0))
    same = (labels[:, None] == labels[None, :]).astype(jnp.float32)
    neg = 1.0 - same
    pos = same - jnp.eye(B, dtype=jnp.float32)
    pos_d = dist * pos + 1e6 * (1.0 - pos)
    neg_d = dist * neg + 1e6 * neg
    hp = jnp.min(pos_d, axis=1)
    hn = jnp.min(neg_d, axis=1)
    return jnp.mean(jnp.maximum(hp - hn + margin, 0.0))


if __name__ == "__main__":
    key = jax.random.PRNGKey(0)
    k1, k2 = jax.random.split(key)

    # Case 1: small shapes consistent with the module (batch=8, hidden=32),
    # exact f32 compute path, single-tile grid.
    B, D = 8, 32
    emb = jax.random.normal(k1, (B, D), dtype=jnp.float32)
    labels = jax.random.randint(k2, (B,), 0, 3, dtype=jnp.int32)

    li = jax.block_until_ready(
        contrastive_loss(emb, labels, mode="infonce", compute_dtype=jnp.float32))
    lt = jax.block_until_ready(
        contrastive_loss(emb, labels, mode="triplet", compute_dtype=jnp.float32))
    assert jnp.allclose(li, _ref_infonce(emb, labels, 0.07), rtol=1e-3, atol=1e-3), li
    assert jnp.allclose(lt, _ref_triplet(emb, labels, 1.0), rtol=1e-3, atol=1e-3), lt

    # Case 2: multi-tile grid + padding/masking path (forced 128 tiles),
    # exact f32 compute path.
    k3, k4 = jax.random.split(k2)
    B2, D2 = 160, 72
    emb2 = jax.random.normal(k3, (B2, D2), dtype=jnp.float32)
    labels2 = jax.random.randint(k4, (B2,), 0, 7, dtype=jnp.int32)
    li2 = jax.block_until_ready(
        contrastive_loss(emb2, labels2, mode="infonce",
                         compute_dtype=jnp.float32, tile_q=128, tile_k=128))
    lt2 = jax.block_until_ready(
        contrastive_loss(emb2, labels2, mode="triplet",
                         compute_dtype=jnp.float32, tile_q=128, tile_k=128))
    assert jnp.allclose(li2, _ref_infonce(emb2, labels2, 0.07), rtol=1e-3, atol=1e-3), li2
    assert jnp.allclose(lt2, _ref_triplet(emb2, labels2, 1.0), rtol=1e-3, atol=1e-3), lt2

    # Case 3: default fast path (bf16 MXU operands, auto tiling); looser check.
    li3 = jax.block_until_ready(contrastive_loss(emb2, labels2, mode="infonce"))
    lt3 = jax.block_until_ready(contrastive_loss(emb2, labels2, mode="triplet"))
    assert jnp.allclose(li3, _ref_infonce(emb2, labels2, 0.07), rtol=5e-2, atol=5e-2), li3
    assert jnp.allclose(lt3, _ref_triplet(emb2, labels2, 1.0), rtol=5e-2, atol=5e-2), lt3

    print("KERNEL_OK")
</pallas_src>

<mosaic_0001>
module attributes {stable_mosaic.version = 11 : i64} {
  func.func @_infonce_kernel(%arg0: i32, %arg1: i32, %arg2: memref<128x128xf32, #tpu.memory_space<vmem>>, %arg3: memref<128x128xf32, #tpu.memory_space<vmem>>, %arg4: memref<128x1xi32, #tpu.memory_space<vmem>>, %arg5: memref<1x128xi32, #tpu.memory_space<vmem>>, %arg6: memref<128x1xf32, #tpu.memory_space<vmem>>, %arg7: memref<128x1xf32, #tpu.memory_space<vmem>>, %arg8: memref<128x1xf32, #tpu.memory_space<vmem>>, %arg9: memref<128x1xf32, #tpu.memory_space<vmem>>, %arg10: memref<128x1xf32, #tpu.memory_space<vmem>>) attributes {dimension_semantics = [#tpu.dimension_semantics<parallel>, #tpu.dimension_semantics<arbitrary>], iteration_bounds = array<i64: 1, 1>, scalar_prefetch = 0 : i64, scratch_operands = 4 : i64, tpu.core_type = #tpu.core_type<tc>, window_params = [{transform_indices = @transform_0, window_bounds = array<i64: 128, 128>}, {transform_indices = @transform_1, window_bounds = array<i64: 128, 128>}, {transform_indices = @transform_2, window_bounds = array<i64: 128, 1>}, {transform_indices = @transform_3, window_bounds = array<i64: 1, 128>}, {transform_indices = @transform_4, window_bounds = array<i64: 128, 1>}]} {
    %c0_i32 = arith.constant 0 : i32
    %0 = arith.cmpi eq, %arg1, %c0_i32 : i32
    %1 = arith.extui %0 : i1 to i32
    %c0_i32_0 = arith.constant 0 : i32
    %2 = arith.cmpi ne, %1, %c0_i32_0 : i32
    scf.if %2 {
      %cst_35 = arith.constant -1.000000e+30 : f32
      %61 = vector.broadcast %cst_35 : f32 to vector<128x1xf32>
      %c0_36 = arith.constant 0 : index
      %c0_37 = arith.constant 0 : index
      %62 = vector.load %arg7[%c0_36, %c0_37] : memref<128x1xf32, #tpu.memory_space<vmem>>, vector<128x1xf32>
      tpu.vector_store %arg7[%c0_36, %c0_37], %61 {strides = array<i32>} : memref<128x1xf32, #tpu.memory_space<vmem>>, vector<128x1xf32>,
      %cst_38 = arith.constant 0.000000e+00 : f32
      %63 = vector.broadcast %cst_38 : f32 to vector<128x1xf32>
      %c0_39 = arith.constant 0 : index
      %c0_40 = arith.constant 0 : index
      %64 = vector.load %arg8[%c0_39, %c0_40] : memref<128x1xf32, #tpu.memory_space<vmem>>, vector<128x1xf32>
      tpu.vector_store %arg8[%c0_39, %c0_40], %63 {strides = array<i32>} : memref<128x1xf32, #tpu.memory_space<vmem>>, vector<128x1xf32>,
      %cst_41 = arith.constant 0.000000e+00 : f32
      %65 = vector.broadcast %cst_41 : f32 to vector<128x1xf32>
      %c0_42 = arith.constant 0 : index
      %c0_43 = arith.constant 0 : index
      %66 = vector.load %arg9[%c0_42, %c0_43] : memref<128x1xf32, #tpu.memory_space<vmem>>, vector<128x1xf32>
      tpu.vector_store %arg9[%c0_42, %c0_43], %65 {strides = array<i32>} : memref<128x1xf32, #tpu.memory_space<vmem>>, vector<128x1xf32>,
      %cst_44 = arith.constant 0.000000e+00 : f32
      %67 = vector.broadcast %cst_44 : f32 to vector<128x1xf32>
      %c0_45 = arith.constant 0 : index
      %c0_46 = arith.constant 0 : index
      %68 = vector.load %arg10[%c0_45, %c0_46] : memref<128x1xf32, #tpu.memory_space<vmem>>, vector<128x1xf32>
      tpu.vector_store %arg10[%c0_45, %c0_46], %67 {strides = array<i32>} : memref<128x1xf32, #tpu.memory_space<vmem>>, vector<128x1xf32>,
    } else {
    }
    %c0 = arith.constant 0 : index
    %c0_1 = arith.constant 0 : index
    %3 = vector.load %arg2[%c0, %c0_1] : memref<128x128xf32, #tpu.memory_space<vmem>>, vector<128x128xf32>
    %c0_2 = arith.constant 0 : index
    %c0_3 = arith.constant 0 : index
    %4 = vector.load %arg3[%c0_2, %c0_3] : memref<128x128xf32, #tpu.memory_space<vmem>>, vector<128x128xf32>
    %cst = arith.constant dense<0.000000e+00> : vector<128x128xf32>
    %5 = tpu.matmul %3, %4, %cst {dimension_numbers = #tpu.dot_dimension_numbers<[1], [1], [0], [0], [0, 0, 1, 0], [], []>} : vector<128x128xf32>, vector<128x128xf32>, vector<128x128xf32> -> vector<128x128xf32>
    %c128_i32 = arith.constant 128 : i32
    %6 = arith.muli %arg1, %c128_i32 : i32
    %7 = tpu.iota {dimensions = array<i32: 1>} : vector<128x128xi32>
    %8 = vector.broadcast %6 : i32 to vector<128x128xi32>
    %9 = arith.addi %8, %7 : vector<128x128xi32>
    %c128_i32_4 = arith.constant 128 : i32
    %10 = arith.muli %arg0, %c128_i32_4 : i32
    %11 = tpu.iota {dimensions = array<i32: 0>} : vector<128x128xi32>
    %12 = vector.broadcast %10 : i32 to vector<128x128xi32>
    %13 = arith.addi %12, %11 : vector<128x128xi32>
    %c8_i32 = arith.constant 8 : i32
    %14 = vector.broadcast %c8_i32 : i32 to vector<128x128xi32>
    %15 = arith.cmpi slt, %9, %14 : vector<128x128xi32>
    %c0_5 = arith.constant 0 : index
    %c0_6 = arith.constant 0 : index
    %16 = vector.load %arg4[%c0_5, %c0_6] : memref<128x1xi32, #tpu.memory_space<vmem>>, vector<128x1xi32>
    %c0_7 = arith.constant 0 : index
    %c0_8 = arith.constant 0 : index
    %17 = vector.load %arg5[%c0_7, %c0_8] : memref<1x128xi32, #tpu.memory_space<vmem>>, vector<1x128xi32>
    %18 = vector.broadcast %16 : vector<128x1xi32> to vector<128x128xi32>
    %19 = vector.broadcast %17 : vector<1x128xi32> to vector<128x128xi32>
    %20 = arith.cmpi eq, %18, %19 : vector<128x128xi32>
    %21 = arith.andi %20, %15 : vector<128x128xi1>
    %22 = arith.cmpi ne, %13, %9 : vector<128x128xi32>
    %23 = arith.andi %21, %22 : vector<128x128xi1>
    %24 = arith.extui %23 : vector<128x128xi1> to vector<128x128xi32>
    %25 = arith.sitofp %24 : vector<128x128xi32> to vector<128x128xf32>
    %cst_9 = arith.constant -1.000000e+30 : f32
    %26 = vector.broadcast %cst_9 : f32 to vector<128x128xf32>
    %27 = arith.select %15, %5, %26 : vector<128x128xi1>, vector<128x128xf32>
    %cst_10 = arith.constant dense<0xFF800000> : vector<128xf32>
    %28 = vector.multi_reduction <maximumf>, %27, %cst_10 [1] : vector<128x128xf32> to vector<128xf32>
    %29 = vector.shape_cast %28 : vector<128xf32> to vector<128x1xf32>
    %c0_11 = arith.constant 0 : index
    %c0_12 = arith.constant 0 : index
    %30 = vector.load %arg7[%c0_11, %c0_12] : memref<128x1xf32, #tpu.memory_space<vmem>>, vector<128x1xf32>
    %31 = arith.maximumf %30, %29 : vector<128x1xf32>
    %32 = vector.broadcast %31 : vector<128x1xf32> to vector<128x128xf32>
    %33 = arith.subf %5, %32 : vector<128x128xf32>
    %34 = math.exp %33 : vector<128x128xf32>
    %cst_13 = arith.constant 0.000000e+00 : f32
    %35 = vector.broadcast %cst_13 : f32 to vector<128x128xf32>
    %36 = arith.select %15, %34, %35 : vector<128x128xi1>, vector<128x128xf32>
    %c0_14 = arith.constant 0 : index
    %c0_15 = arith.constant 0 : index
    %37 = vector.load %arg8[%c0_14, %c0_15] : memref<128x1xf32, #tpu.memory_space<vmem>>, vector<128x1xf32>
    %c0_16 = arith.constant 0 : index
    %c0_17 = arith.constant 0 : index
    %38 = vector.load %arg7[%c0_16, %c0_17] : memref<128x1xf32, #tpu.memory_space<vmem>>, vector<128x1xf32>
    %39 = arith.subf %38, %31 : vector<128x1xf32>
    %40 = math.exp %39 : vector<128x1xf32>
    %41 = arith.mulf %37, %40 : vector<128x1xf32>
    %cst_18 = arith.constant dense<0.000000e+00> : vector<128xf32>
    %42 = vector.multi_reduction <add>, %36, %cst_18 [1] : vector<128x128xf32> to vector<128xf32>
    %43 = vector.shape_cast %42 : vector<128xf32> to vector<128x1xf32>
    %44 = arith.addf %41, %43 : vector<128x1xf32>
    %c0_19 = arith.constant 0 : index
    %c0_20 = arith.constant 0 : index
    %45 = vector.load %arg8[%c0_19, %c0_20] : memref<128x1xf32, #tpu.memory_space<vmem>>, vector<128x1xf32>
    tpu.vector_store %arg8[%c0_19, %c0_20], %44 {strides = array<i32>} : memref<128x1xf32, #tpu.memory_space<vmem>>, vector<128x1xf32>,
    %c0_21 = arith.constant 0 : index
    %c0_22 = arith.constant 0 : index
    %46 = vector.load %arg7[%c0_21, %c0_22] : memref<128x1xf32, #tpu.memory_space<vmem>>, vector<128x1xf32>
    tpu.vector_store %arg7[%c0_21, %c0_22], %31 {strides = array<i32>} : memref<128x1xf32, #tpu.memory_space<vmem>>, vector<128x1xf32>,
    %c0_23 = arith.constant 0 : index
    %c0_24 = arith.constant 0 : index
    %47 = vector.load %arg9[%c0_23, %c0_24] : memref<128x1xf32, #tpu.memory_space<vmem>>, vector<128x1xf32>
    %48 = arith.mulf %25, %5 : vector<128x128xf32>
    %cst_25 = arith.constant dense<0.000000e+00> : vector<128xf32>
    %49 = vector.multi_reduction <add>, %48, %cst_25 [1] : vector<128x128xf32> to vector<128xf32>
    %50 = vector.shape_cast %49 : vector<128xf32> to vector<128x1xf32>
    %51 = arith.addf %47, %50 : vector<128x1xf32>
    %c0_26 = arith.constant 0 : index
    %c0_27 = arith.constant 0 : index
    %52 = vector.load %arg9[%c0_26, %c0_27] : memref<128x1xf32, #tpu.memory_space<vmem>>, vector<128x1xf32>
    tpu.vector_store %arg9[%c0_26, %c0_27], %51 {strides = array<i32>} : memref<128x1xf32, #tpu.memory_space<vmem>>, vector<128x1xf32>,
    %c0_28 = arith.constant 0 : index
    %c0_29 = arith.constant 0 : index
    %53 = vector.load %arg10[%c0_28, %c0_29] : memref<128x1xf32, #tpu.memory_space<vmem>>, vector<128x1xf32>
    %cst_30 = arith.constant dense<0.000000e+00> : vector<128xf32>
    %54 = vector.multi_reduction <add>, %25, %cst_30 [1] : vector<128x128xf32> to vector<128xf32>
    %55 = vector.shape_cast %54 : vector<128xf32> to vector<128x1xf32>
    %56 = arith.addf %53, %55 : vector<128x1xf32>
    %c0_31 = arith.constant 0 : index
    %c0_32 = arith.constant 0 : index
    %57 = vector.load %arg10[%c0_31, %c0_32] : memref<128x1xf32, #tpu.memory_space<vmem>>, vector<128x1xf32>
    tpu.vector_store %arg10[%c0_31, %c0_32], %56 {strides = array<i32>} : memref<128x1xf32, #tpu.memory_space<vmem>>, vector<128x1xf32>,
    %c0_i32_33 = arith.constant 0 : i32
    %58 = arith.cmpi eq, %arg1, %c0_i32_33 : i32
    %59 = arith.extui %58 : i1 to i32
    %c0_i32_34 = arith.constant 0 : i32
    %60 = arith.cmpi ne, %59, %c0_i32_34 : i32
    scf.if %60 {
      %c128_i32_35 = arith.constant 128 : i32
      %61 = arith.muli %arg0, %c128_i32_35 : i32
      %62 = tpu.iota {dimensions = array<i32: 0>} : vector<128x1xi32>
      %63 = vector.broadcast %61 : i32 to vector<128x1xi32>
      %64 = arith.addi %63, %62 : vector<128x1xi32>
      %c8_i32_36 = arith.constant 8 : i32
      %65 = vector.broadcast %c8_i32_36 : i32 to vector<128x1xi32>
      %66 = arith.cmpi slt, %64, %65 : vector<128x1xi32>
      %67 = arith.extui %66 : vector<128x1xi1> to vector<128x1xi32>
      %68 = arith.sitofp %67 : vector<128x1xi32> to vector<128x1xf32>
      %c0_37 = arith.constant 0 : index
      %c0_38 = arith.constant 0 : index
      %69 = vector.load %arg7[%c0_37, %c0_38] : memref<128x1xf32, #tpu.memory_space<vmem>>, vector<128x1xf32>
      %c0_39 = arith.constant 0 : index
      %c0_40 = arith.constant 0 : index
      %70 = vector.load %arg8[%c0_39, %c0_40] : memref<128x1xf32, #tpu.memory_space<vmem>>, vector<128x1xf32>
      %71 = math.log %70 : vector<128x1xf32>
      %72 = arith.addf %69, %71 : vector<128x1xf32>
      %c0_41 = arith.constant 0 : index
      %c0_42 = arith.constant 0 : index
      %73 = vector.load %arg10[%c0_41, %c0_42] : memref<128x1xf32, #tpu.memory_space<vmem>>, vector<128x1xf32>
      %c0_43 = arith.constant 0 : index
      %c0_44 = arith.constant 0 : index
      %74 = vector.load %arg9[%c0_43, %c0_44] : memref<128x1xf32, #tpu.memory_space<vmem>>, vector<128x1xf32>
      %75 = arith.mulf %73, %72 : vector<128x1xf32>
      %76 = arith.subf %74, %75 : vector<128x1xf32>
      %cst_45 = arith.constant 0.000000e+00 : f32
      %77 = vector.broadcast %cst_45 : f32 to vector<128x1xf32>
      %78 = arith.subf %77, %76 : vector<128x1xf32>
      %cst_46 = arith.constant 1.000000e+00 : f32
      %79 = vector.broadcast %cst_46 : f32 to vector<128x1xf32>
      %80 = arith.maximumf %73, %79 : vector<128x1xf32>
      %81 = arith.divf %78, %80 : vector<128x1xf32>
      %82 = arith.mulf %81, %68 : vector<128x1xf32>
      %c0_47 = arith.constant 0 : index
      %c0_48 = arith.constant 0 : index
      %83 = vector.load %arg6[%c0_47, %c0_48] : memref<128x1xf32, #tpu.memory_space<vmem>>, vector<128x1xf32>
      tpu.vector_store %arg6[%c0_47, %c0_48], %82 {strides = array<i32>} : memref<128x1xf32, #tpu.memory_space<vmem>>, vector<128x1xf32>,
    } else {
    }
    return
  }
  func.func @transform_0(%arg0: i32, %arg1: i32) -> (i32, i32) {
    %c0_i32 = arith.constant 0 : i32
    %c0_i32_0 = arith.constant 0 : i32
    return %arg0, %c0_i32 : i32, i32
  }
  func.func @transform_1(%arg0: i32, %arg1: i32) -> (i32, i32) {
    %c0_i32 = arith.constant 0 : i32
    %c0_i32_0 = arith.constant 0 : i32
    return %arg1, %c0_i32 : i32, i32
  }
  func.func @transform_2(%arg0: i32, %arg1: i32) -> (i32, i32) {
    %c0_i32 = arith.constant 0 : i32
    %c0_i32_0 = arith.constant 0 : i32
    return %arg0, %c0_i32 : i32, i32
  }
  func.func @transform_3(%arg0: i32, %arg1: i32) -> (i32, i32) {
    %c0_i32 = arith.constant 0 : i32
    %c0_i32_0 = arith.constant 0 : i32
    return %c0_i32, %arg1 : i32, i32
  }
  func.func @transform_4(%arg0: i32, %arg1: i32) -> (i32, i32) {
    %c0_i32 = arith.constant 0 : i32
    %c0_i32_0 = arith.constant 0 : i32
    return %arg0, %c0_i32 : i32, i32
  }
}

</mosaic_0001>

<bundles_post_ra>
// kernel: tpu_custom_call.1
= control target key start
LH: loop header
LB: loop body
LE: loop exit
PB: predicated region body
PF: predicated region fallthrough
CT: control target
= control target key end

     0   :  { %9 = vsyncpa [#allocation7], 0  ;;  %s1696_s18 = smov [#allocation6]   ;;  %s1697_s20 = smov 128   ;;  %s3172_s0 = inlined_call_operand.vmem [shape: f32[128,128], index: 0, kind: input, shape index: {}]   ;;  %s3173_s1 = inlined_call_operand.hbm [shape: f32[128,128], index: 1, kind: input, shape index: {}]   ;;  %s3174_s2 = inlined_call_operand.vmem [shape: s32[128,1], index: 2, kind: input, shape index: {}]   ;;  %s3175_s3 = inlined_call_operand.vmem [shape: s32[1,128], index: 3, kind: input, shape index: {}]   ;;  %s3176_s4 = inlined_call_operand.vmem [shape: f32[128,1], index: 4, kind: output, shape index: {}]  }
   0x1   :  { %s16_s17 = sshll.u32 %s3173_s1, 4  ;;  %s18_s19 = sshll.u32 %s1696_s18, 4  ;;  %s17_s17 = int_to_ptr.hbm [resolvable:$true] %s16_s17  ;;  %s19_s19 = int_to_ptr.vmem [resolvable:$true] %s18_s19 }
   0x2   :  { %s1698_s21 = smov 8  }
   0x3   :  { %24 = dma.hbm_to_vmem [thread:$0]  %s17_s17, 2048, %s19_s19, [#allocation7], %s1697_s20, %s1697_s20, %s1698_s21  }
   0x4   :  { %1694 = dma.done.wait [#allocation7], 2048  }
   0x5   :  { %1695 = vsyncadd [#allocation7], 4294965248  ;;  %v1699_v0 = vmov 0   ;;  %v242_v1 = vld [vmem:[%s3174_s2 + $0x10] sm:$0xff]  ;;  %v240_v2 = vld [vmem:[%s3174_s2] sm:$0xff]  ;;  %v200_v50 = vlaneseq  ;;  %v1700_v60 = vmov 0.0  }
   0x6   :  { %1538 = vset.pattern.permute.xlu1 %v1699_v0  ;;  %1537 = vset.pattern.permute.xlu0 %v1699_v0  ;;  %v133_v3 = vld [vmem:[#allocation6 + $0x78] sm:$0xff]  ;;  %v132_v4 = vld [vmem:[#allocation6 + $0x70] sm:$0xff]  ;;  %v244_v5 = vld [vmem:[%s3174_s2 + $0x20] sm:$0xff] }
   0x7   :  { %1539 = vset.pattern.permute.xlu2 %v1699_v0  ;;  %264 = vperm.xlu1 %1538, %v242_v1   ;;  %v243_v6 = vld [vmem:[%s3174_s2 + $0x18] sm:$0xff]  ;;  %v241_v7 = vld [vmem:[%s3174_s2 + $0x8] sm:$0xff]  ;;  %v130_v10 = vld [vmem:[#allocation6 + $0x60] sm:$0xff]  ;;  %v1826_v51 = vshrl.u32 %v200_v50, 7  ;;  %v1828_v53 = vand.u32 127, %v200_v50 }
   0x8   :  { %258 = vperm.xlu0 %1537, %v240_v2   ;;  %134 = vmatpush.xpose.msra.mxu0 %v133_v3  ;;  %v131_v8 = vld [vmem:[#allocation6 + $0x68] sm:$0xff]  ;;  %v247_v11 = vld [vmem:[%s3174_s2 + $0x38] sm:$0xff]  ;;  %v246_v12 = vld [vmem:[%s3174_s2 + $0x30] sm:$0xff] }
   0x9   :  { %1483 = vmatpush.xpose.msra.mxu1 %v133_v3  ;;  %1484 = vmatpush.xpose.msra.mxu2 %v133_v3  ;;  %v245_v9 = vld [vmem:[%s3174_s2 + $0x28] sm:$0xff]  ;;  %v129_v13 = vld [vmem:[#allocation6 + $0x58] sm:$0xff]  ;;  %v248_v14 = vld [vmem:[%s3174_s2 + $0x40] sm:$0xff]  ;;  %v208_v55 = vadd.s32 16, %v1826_v51  ;;  %vm239_vm0 = vcmp.lt.s32.totalorder %v1828_v53, 8  ;;  %v211_v58 = vadd.s32 40, %v1826_v51 }
   0xa   :  { %1485 = vmatpush.xpose.msra.mxu3 %v133_v3  ;;  %270 = vperm.xlu2 %1539, %v244_v5   ;;  %v128_v15 = vld [vmem:[#allocation6 + $0x50] sm:$0xff]  ;;  %v249_v17 = vld [vmem:[%s3174_s2 + $0x48] sm:$0xff]  ;;  %v251_v19 = vld [vmem:[%s3174_s2 + $0x58] sm:$0xff]  ;;  %v209_v62 = vadd.s32 24, %v1826_v51  ;;  %v207_v63 = vadd.s32 8, %v1826_v51  ;;  %v214_v3 = vadd.s32 64, %v1826_v51 }
   0xb   :  { %v250_v16 = vld [vmem:[%s3174_s2 + $0x50] sm:$0xff]  ;;  %v127_v18 = vld [vmem:[#allocation6 + $0x48] sm:$0xff]  ;;  %v126_v20 = vld [vmem:[#allocation6 + $0x40] sm:$0xff]  ;;  %vm340_vm2 = vcmp.ne.s32.totalorder %v208_v55, %v1828_v53  ;;  %vm343_vm7 = vcmp.ne.s32.totalorder %v211_v58, %v1828_v53 }
   0xc   :  { %135 = vmatpush.xpose.msra.mxu0 %v132_v4  ;;  %v253_v21 = vld [vmem:[%s3174_s2 + $0x68] sm:$0xff]  ;;  %v252_v22 = vld [vmem:[%s3174_s2 + $0x60] sm:$0xff]  ;;  %v125_v23 = vld [vmem:[#allocation6 + $0x38] sm:$0xff]  ;;  %vm341_vm12 = vcmp.ne.s32.totalorder %v209_v62, %v1828_v53  ;;  %vm339_vm15 = vcmp.ne.s32.totalorder %v207_v63, %v1828_v53 }
   0xd   :  { %1486 = vmatpush.xpose.msra.mxu1 %v132_v4  ;;  %1487 = vmatpush.xpose.msra.mxu2 %v132_v4  ;;  %v254_v24 = vld [vmem:[%s3174_s2 + $0x70] sm:$0xff]  ;;  %v255_v26 = vld [vmem:[%s3174_s2 + $0x78] sm:$0xff]  ;;  %v123_v27 = vld [vmem:[#allocation6 + $0x28] sm:$0xff] }
   0xe   :  { %1488 = vmatpush.xpose.msra.mxu3 %v132_v4  ;;  %v124_v25 = vld [vmem:[#allocation6 + $0x30] sm:$0xff]  ;;  %v122_v28 = vld [vmem:[#allocation6 + $0x20] sm:$0xff]  ;;  %v121_v29 = vld [vmem:[#allocation6 + $0x18] sm:$0xff]  ;;  %v210_v4 = vadd.s32 32, %v1826_v51 }
   0xf   :  { %267 = vperm.xlu1 %1538, %v243_v6   ;;  %v120_v30 = vld [vmem:[#allocation6 + $0x10] sm:$0xff]  ;;  %v119_v31 = vld [vmem:[#allocation6 + $0x8] sm:$0xff]  ;;  %v118_v32 = vld [vmem:[#allocation6] sm:$0xff] }
  0x10   :  { %261 = vperm.xlu0 %1537, %v241_v7   ;;  %136 = vmatpush.xpose.msra.mxu0 %v131_v8  ;;  %v102_v33 = vld [vmem:[%s3172_s0] sm:$0xff]  ;;  %v103_v37 = vld [vmem:[%s3172_s0 + $0x8] sm:$0xff]  ;;  %v104_v41 = vld [vmem:[%s3172_s0 + $0x10] sm:$0xff]  ;;  %v212_v7 = vadd.s32 48, %v1826_v51 }
  0x11   :  { %1489 = vmatpush.xpose.msra.mxu1 %v131_v8  ;;  %1490 = vmatpush.xpose.msra.mxu2 %v131_v8  ;;  %v106_v34 = vld [vmem:[%s3172_s0 + $0x20] sm:$0xff]  ;;  %v107_v38 = vld [vmem:[%s3172_s0 + $0x28] sm:$0xff]  ;;  %v108_v42 = vld [vmem:[%s3172_s0 + $0x30] sm:$0xff] }
  0x12   :  { %1491 = vmatpush.xpose.msra.mxu3 %v131_v8  ;;  %273 = vperm.xlu2 %1539, %v245_v9   ;;  %v110_v35 = vld [vmem:[%s3172_s0 + $0x40] sm:$0xff]  ;;  %v111_v39 = vld [vmem:[%s3172_s0 + $0x48] sm:$0xff]  ;;  %v112_v43 = vld [vmem:[%s3172_s0 + $0x50] sm:$0xff] }
  0x13   :  { %v114_v36 = vld [vmem:[%s3172_s0 + $0x60] sm:$0xff]  ;;  %v115_v40 = vld [vmem:[%s3172_s0 + $0x68] sm:$0xff]  ;;  %v116_v44 = vld [vmem:[%s3172_s0 + $0x70] sm:$0xff] }
  0x14   :  { %137 = vmatpush.xpose.msra.mxu0 %v130_v10  ;;  %v105_v45 = vld [vmem:[%s3172_s0 + $0x18] sm:$0xff]  ;;  %v1833_v54 = vld [vmem:[%s3175_s3] ss:$0 sm:$0xff] }
  0x15   :  { %1492 = vmatpush.xpose.msra.mxu1 %v130_v10  ;;  %1493 = vmatpush.xpose.msra.mxu2 %v130_v10  ;;  %v109_v46 = vld [vmem:[%s3172_s0 + $0x38] sm:$0xff] }
  0x16   :  { %1494 = vmatpush.xpose.msra.mxu3 %v130_v10  ;;  %v113_v47 = vld [vmem:[%s3172_s0 + $0x58] sm:$0xff] }
  0x17   :  { %279 = vperm.xlu1 %1538, %v247_v11   ;;  %v117_v48 = vld [vmem:[%s3172_s0 + $0x78] sm:$0xff] }
  0x18   :  { %276 = vperm.xlu0 %1537, %v246_v12   ;;  %138 = vmatpush.xpose.msra.mxu0 %v129_v13  ;;  %v217_v12 = vadd.s32 88, %v1826_v51 }
  0x19   :  { %1495 = vmatpush.xpose.msra.mxu1 %v129_v13  ;;  %1496 = vmatpush.xpose.msra.mxu2 %v129_v13 }
  0x1a   :  { %1497 = vmatpush.xpose.msra.mxu3 %v129_v13  ;;  %282 = vperm.xlu2 %1539, %v248_v14   ;;  %v213_v13 = vadd.s32 56, %v1826_v51 }
  0x1c   :  { %139 = vmatpush.xpose.msra.mxu0 %v128_v15 }
  0x1d   :  { %1498 = vmatpush.xpose.msra.mxu1 %v128_v15  ;;  %1499 = vmatpush.xpose.msra.mxu2 %v128_v15 }
  0x1e   :  { %1500 = vmatpush.xpose.msra.mxu3 %v128_v15 }
  0x1f   :  { %288 = vperm.xlu1 %1538, %v250_v16  }
  0x20   :  { %285 = vperm.xlu0 %1537, %v249_v17   ;;  %140 = vmatpush.xpose.msra.mxu0 %v127_v18  ;;  %v215_v17 = vadd.s32 72, %v1826_v51 }
  0x21   :  { %1501 = vmatpush.xpose.msra.mxu1 %v127_v18  ;;  %1502 = vmatpush.xpose.msra.mxu2 %v127_v18 }
  0x22   :  { %1503 = vmatpush.xpose.msra.mxu3 %v127_v18  ;;  %291 = vperm.xlu2 %1539, %v251_v19  }
  0x24   :  { %141 = vmatpush.xpose.msra.mxu0 %v126_v20 }
  0x25   :  { %1504 = vmatpush.xpose.msra.mxu1 %v126_v20  ;;  %1505 = vmatpush.xpose.msra.mxu2 %v126_v20 }
  0x26   :  { %1506 = vmatpush.xpose.msra.mxu3 %v126_v20 }
  0x27   :  { %297 = vperm.xlu1 %1538, %v253_v21   ;;  %v220_v21 = vadd.s32 112, %v1826_v51 }
  0x28   :  { %294 = vperm.xlu0 %1537, %v252_v22   ;;  %142 = vmatpush.xpose.msra.mxu0 %v125_v23  ;;  %v216_v22 = vadd.s32 80, %v1826_v51 }
  0x29   :  { %1507 = vmatpush.xpose.msra.mxu1 %v125_v23  ;;  %1508 = vmatpush.xpose.msra.mxu2 %v125_v23 }
  0x2a   :  { %1509 = vmatpush.xpose.msra.mxu3 %v125_v23  ;;  %300 = vperm.xlu2 %1539, %v254_v24  }
  0x2c   :  { %143 = vmatpush.xpose.msra.mxu0 %v124_v25 }
  0x2d   :  { %1510 = vmatpush.xpose.msra.mxu1 %v124_v25  ;;  %1511 = vmatpush.xpose.msra.mxu2 %v124_v25 }
  0x2e   :  { %1512 = vmatpush.xpose.msra.mxu3 %v124_v25 }
  0x30   :  { %303 = vperm.xlu0 %1537, %v255_v26   ;;  %144 = vmatpush.xpose.msra.mxu0 %v123_v27  ;;  %v218_v26 = vadd.s32 96, %v1826_v51 }
  0x31   :  { %1513 = vmatpush.xpose.msra.mxu1 %v123_v27  ;;  %1514 = vmatpush.xpose.msra.mxu2 %v123_v27 }
  0x32   :  { %1515 = vmatpush.xpose.msra.mxu3 %v123_v27 }
  0x34   :  { %145 = vmatpush.xpose.msra.mxu0 %v122_v28 }
  0x35   :  { %1516 = vmatpush.xpose.msra.mxu1 %v122_v28  ;;  %1517 = vmatpush.xpose.msra.mxu2 %v122_v28 }
  0x36   :  { %1518 = vmatpush.xpose.msra.mxu3 %v122_v28 }
  0x38   :  { %146 = vmatpush.xpose.msra.mxu0 %v121_v29 }
  0x39   :  { %1519 = vmatpush.xpose.msra.mxu1 %v121_v29  ;;  %1520 = vmatpush.xpose.msra.mxu2 %v121_v29 }
  0x3a   :  { %1521 = vmatpush.xpose.msra.mxu3 %v121_v29  ;;  %v219_v29 = vadd.s32 104, %v1826_v51 }
  0x3c   :  { %147 = vmatpush.xpose.msra.mxu0 %v120_v30 }
  0x3d   :  { %1522 = vmatpush.xpose.msra.mxu1 %v120_v30  ;;  %1523 = vmatpush.xpose.msra.mxu2 %v120_v30 }
  0x3e   :  { %1524 = vmatpush.xpose.msra.mxu3 %v120_v30 }
  0x40   :  { %148 = vmatpush.xpose.msra.mxu0 %v119_v31 }
  0x41   :  { %1525 = vmatpush.xpose.msra.mxu1 %v119_v31  ;;  %1526 = vmatpush.xpose.msra.mxu2 %v119_v31 }
  0x42   :  { %1527 = vmatpush.xpose.msra.mxu3 %v119_v31 }
  0x44   :  { %149 = vmatpush.xpose.msra.mxu0 %v118_v32 }
  0x45   :  { %1528 = vmatpush.xpose.msra.mxu1 %v118_v32  ;;  %1529 = vmatpush.xpose.msra.mxu2 %v118_v32 }
  0x46   :  { %1530 = vmatpush.xpose.msra.mxu3 %v118_v32  ;;  %v221_v32 = vadd.s32 120, %v1826_v51 }
  0x47   :  { %150 = vmatmul.f32.vlgmr.msra.gmra.mxu0 %v102_v33 }
  0x48   :  { %162 = vmatmul.f32.vlgmr.msra.gmra.mxu1 %v106_v34  ;;  %174 = vmatmul.f32.vlgmr.msra.gmra.mxu2 %v110_v35 }
  0x49   :  { %186 = vmatmul.f32.vlgmr.msra.gmra.mxu3 %v114_v36 }
  0x4f   :  { %153 = vmatmul.f32.gmra.mxu0 %v103_v37 }
  0x50   :  { %165 = vmatmul.f32.gmra.mxu1 %v107_v38  ;;  %177 = vmatmul.f32.gmra.mxu2 %v111_v39 }
  0x51   :  { %189 = vmatmul.f32.gmra.mxu3 %v115_v40 }
  0x57   :  { %156 = vmatmul.f32.gmra.mxu0 %v104_v41 }
  0x58   :  { %168 = vmatmul.f32.gmra.mxu1 %v108_v42  ;;  %180 = vmatmul.f32.gmra.mxu2 %v112_v43 }
  0x59   :  { %192 = vmatmul.f32.gmra.mxu3 %v116_v44 }
  0x5f   :  { %159 = vmatmul.f32.gmra.mxu0 %v105_v45 }
  0x60   :  { %171 = vmatmul.f32.gmra.mxu1 %v109_v46  ;;  %183 = vmatmul.f32.gmra.mxu2 %v113_v47 }
  0x61   :  { %195 = vmatmul.f32.gmra.mxu3 %v117_v48 }
  0x64   :  { %v271_v49 = vpop.permute.xlu2 %270 }
  0x6c   :  { %v274_v52 = vpop.permute.xlu2 %273 }
  0x6d   :  { %vm311_vm4 = vcmp.eq.s32.totalorder %v274_v52, %v1833_v54 }
  0x6e   :  { %vm327_vm6 = vmand %vm311_vm4, %vm239_vm0 }
  0x6f   :  { %vm359_vm9 = vmand %vm327_vm6, %vm343_vm7  ;;  %vm342_vm7 = vcmp.ne.s32.totalorder %v210_v4, %v1828_v53 }
  0x70   :  { %v1873_v5 = vsel %vm359_vm9, 1.0, %v1700_v60 }
  0x74   :  { %v283_v59 = vpop.permute.xlu2 %282 }
  0x75   :  { %vm314_vm8 = vcmp.eq.s32.totalorder %v283_v59, %v1833_v54 }
  0x76   :  { %vm1860_vm13 = vmand %vm314_vm8, %vm239_vm0 }
  0x79   :  { %v265_v56 = vpop.permute.xlu1 %264 }
  0x7a   :  { %v1837_v57 = vpop.permute.xlu0 %258  ;;  %vm308_vm1 = vcmp.eq.s32.totalorder %v265_v56, %v1833_v54 }
  0x7b   :  { %vm324_vm3 = vmand %vm308_vm1, %vm239_vm0  ;;  %vm310_vm1 = vcmp.eq.s32.totalorder %v271_v49, %v1833_v54 }
  0x7c   :  { %vm356_vm5 = vmand %vm324_vm3, %vm340_vm2  ;;  %v292_v8 = vpop.permute.xlu2 %291 }
  0x7d   :  { %v1846_v61 = vsel %vm356_vm5, 1.0, %v1700_v60  ;;  %vm346_vm5 = vcmp.ne.s32.totalorder %v214_v3, %v1828_v53  ;;  %vm326_vm6 = vmand %vm310_vm1, %vm239_vm0 }
  0x7e   :  { %903 = vadd.xlane.f32.xlu2 %v1846_v61  ;;  %vm362_vm8 = vmand %vm1860_vm13, %vm346_vm5 }
  0x7f   :  { %v1900_v14 = vsel %vm362_vm8, 1.0, %v1700_v60  ;;  %vm347_vm8 = vcmp.ne.s32.totalorder %v215_v17, %v1828_v53 }
  0x81   :  { %v268_v0 = vpop.permute.xlu1 %267 }
  0x82   :  { %v262_v1 = vpop.permute.xlu0 %261  ;;  %vm309_vm10 = vcmp.eq.s32.totalorder %v268_v0, %v1833_v54 }
  0x83   :  { %vm307_vm11 = vcmp.eq.s32.totalorder %v262_v1, %v1833_v54  ;;  %vm325_vm14 = vmand %vm309_vm10, %vm239_vm0 }
  0x84   :  { %vm323_vm2 = vmand %vm307_vm11, %vm239_vm0  ;;  %vm344_vm11 = vcmp.ne.s32.totalorder %v212_v7, %v1828_v53  ;;  %v301_v18 = vpop.permute.xlu2 %300 }
  0x85   :  { %vm357_vm3 = vmand %vm325_vm14, %vm341_vm12  ;;  %vm317_vm12 = vcmp.eq.s32.totalorder %v292_v8, %v1833_v54 }
  0x86   :  { %v1876_v6 = vsel %vm357_vm3, 1.0, %v1700_v60  ;;  %vm355_vm4 = vmand %vm323_vm2, %vm339_vm15  ;;  %909 = vadd.xlane.f32.xlu2 %v1873_v5  ;;  %vm349_vm2 = vcmp.ne.s32.totalorder %v217_v12, %v1828_v53 }
  0x87   :  { %905 = vadd.xlane.f32.xlu1 %v1876_v6  ;;  %v1885_v9 = vsel %vm355_vm4, 1.0, %v1700_v60  ;;  %vm358_vm10 = vmand %vm326_vm6, %vm342_vm7  ;;  %vm345_vm4 = vcmp.ne.s32.totalorder %v213_v13, %v1828_v53 }
  0x88   :  { %901 = vadd.xlane.f32.xlu0 %v1885_v9  ;;  %v1903_v15 = vsel %vm358_vm10, 1.0, %v1700_v60  ;;  %vm333_vm1 = vmand %vm317_vm12, %vm239_vm0 }
  0x89   :  { %v280_v10 = vpop.permute.xlu1 %279  ;;  %vm365_vm5 = vmand %vm333_vm1, %vm349_vm2  ;;  %vm348_vm1 = vcmp.ne.s32.totalorder %v216_v22, %v1828_v53 }
  0x8a   :  { %v277_v11 = vpop.permute.xlu0 %276  ;;  %vm313_vm14 = vcmp.eq.s32.totalorder %v280_v10, %v1833_v54  ;;  %v1927_v23 = vsel %vm365_vm5, 1.0, %v1700_v60  ;;  %vm350_vm5 = vcmp.ne.s32.totalorder %v218_v26, %v1828_v53 }
  0x8b   :  { %vm312_vm9 = vcmp.eq.s32.totalorder %v277_v11, %v1833_v54  ;;  %vm329_vm3 = vmand %vm313_vm14, %vm239_vm0 }
  0x8c   :  { %vm328_vm15 = vmand %vm312_vm9, %vm239_vm0  ;;  %vm320_vm9 = vcmp.eq.s32.totalorder %v301_v18, %v1833_v54 }
  0x8d   :  { %vm360_vm13 = vmand %vm328_vm15, %vm344_vm11  ;;  %vm352_vm15 = vcmp.ne.s32.totalorder %v220_v21, %v1828_v53 }
  0x8e   :  { %v1906_v16 = vsel %vm360_vm13, 1.0, %v1700_v60  ;;  %915 = vadd.xlane.f32.xlu2 %v1900_v14  ;;  %vm361_vm7 = vmand %vm329_vm3, %vm345_vm4 }
  0x8f   :  { %911 = vadd.xlane.f32.xlu1 %v1906_v16  ;;  %v1930_v24 = vsel %vm361_vm7, 1.0, %v1700_v60  ;;  %vm336_vm14 = vmand %vm320_vm9, %vm239_vm0 }
  0x90   :  { %907 = vadd.xlane.f32.xlu0 %v1903_v15  ;;  %vm368_vm2 = vmand %vm336_vm14, %vm352_vm15 }
  0x91   :  { %v289_v19 = vpop.permute.xlu1 %288  ;;  %v1952_v30 = vsel %vm368_vm2, 1.0, %v1700_v60 }
  0x92   :  { %v286_v20 = vpop.permute.xlu0 %285  ;;  %vm316_vm10 = vcmp.eq.s32.totalorder %v289_v19, %v1833_v54 }
  0x93   :  { %vm315_vm6 = vcmp.eq.s32.totalorder %v286_v20, %v1833_v54  ;;  %vm332_vm13 = vmand %vm316_vm10, %vm239_vm0  ;;  %vm351_vm10 = vcmp.ne.s32.totalorder %v219_v29, %v1828_v53 }
  0x94   :  { %vm331_vm11 = vmand %vm315_vm6, %vm239_vm0 }
  0x95   :  { %vm363_vm12 = vmand %vm331_vm11, %vm347_vm8  ;;  %vm353_vm11 = vcmp.ne.s32.totalorder %v221_v32, %v1828_v53 }
  0x96   :  { %v1933_v25 = vsel %vm363_vm12, 1.0, %v1700_v60  ;;  %921 = vadd.xlane.f32.xlu2 %v1927_v23  ;;  %vm364_vm4 = vmand %vm332_vm13, %vm348_vm1  ;;  %vm306_vm1 = vcmp.eq.s32.totalorder %v1837_v57, %v1833_v54 }
  0x97   :  { %917 = vadd.xlane.f32.xlu1 %v1933_v25  ;;  %v1955_v31 = vsel %vm364_vm4, 1.0, %v1700_v60  ;;  %vm322_vm2 = vmand %vm306_vm1, %vm239_vm0 }
  0x98   :  { %913 = vadd.xlane.f32.xlu0 %v1930_v24 }
  0x99   :  { %v298_v27 = vpop.permute.xlu1 %297 }
  0x9a   :  { %v295_v28 = vpop.permute.xlu0 %294  ;;  %vm319_vm6 = vcmp.eq.s32.totalorder %v298_v27, %v1833_v54 }
  0x9b   :  { %vm318_vm3 = vcmp.eq.s32.totalorder %v295_v28, %v1833_v54  ;;  %vm335_vm9 = vmand %vm319_vm6, %vm239_vm0 }
  0x9c   :  { %vm334_vm7 = vmand %vm318_vm3, %vm239_vm0  ;;  %vm338_vm3 = vcmp.ne.s32.totalorder %v1826_v51, %v1828_v53 }
  0x9d   :  { %vm366_vm8 = vmand %vm334_vm7, %vm350_vm5  ;;  %vm37_vm5 = vcmask 7168  }
  0x9e   :  { %v1959_v33 = vsel %vm366_vm8, 1.0, %v1700_v60  ;;  %927 = vadd.xlane.f32.xlu2 %v1952_v30  ;;  %vm367_vm14 = vmand %vm335_vm9, %vm351_vm10  ;;  %88 = vst.msk [vmem:[#allocation5 + $0x10] sm:$0xff] %vm37_vm5, %v1700_v60 }
  0x9f   :  { %923 = vadd.xlane.f32.xlu1 %v1959_v33  ;;  %v1977_v36 = vsel %vm367_vm14, 1.0, %v1700_v60  ;;  %vm354_vm4 = vmand %vm322_vm2, %vm338_vm3  ;;  %54 = vst.msk [vmem:[#allocation3] sm:$0xff] %vm37_vm5, %v1700_v60 }
  0xa0   :  { %919 = vadd.xlane.f32.xlu0 %v1955_v31  ;;  %v1467_v37 = vsel %vm354_vm4, 1.0, %v1700_v60  ;;  %55 = vst.msk [vmem:[#allocation3 + $0x8] sm:$0xff] %vm37_vm5, %v1700_v60 }
  0xa1   :  { %56 = vst.msk [vmem:[#allocation3 + $0x10] sm:$0xff] %vm37_vm5, %v1700_v60 }
  0xa2   :  { %v304_v34 = vpop.permute.xlu0 %303  ;;  %57 = vst.msk [vmem:[#allocation3 + $0x18] sm:$0xff] %vm37_vm5, %v1700_v60 }
  0xa3   :  { %vm321_vm12 = vcmp.eq.s32.totalorder %v304_v34, %v1833_v54  ;;  %58 = vst.msk [vmem:[#allocation3 + $0x20] sm:$0xff] %vm37_vm5, %v1700_v60 }
  0xa4   :  { %vm337_vm15 = vmand %vm321_vm12, %vm239_vm0  ;;  %59 = vst.msk [vmem:[#allocation3 + $0x28] sm:$0xff] %vm37_vm5, %v1700_v60 }
  0xa5   :  { %vm369_vm13 = vmand %vm337_vm15, %vm353_vm11  ;;  %60 = vst.msk [vmem:[#allocation3 + $0x30] sm:$0xff] %vm37_vm5, %v1700_v60 }
  0xa6   :  { %v1972_v35 = vsel %vm369_vm13, 1.0, %v1700_v60  ;;  %61 = vst.msk [vmem:[#allocation3 + $0x38] sm:$0xff] %vm37_vm5, %v1700_v60 }
  0xa7   :  { %929 = vadd.xlane.f32.xlu1 %v1972_v35  ;;  %62 = vst.msk [vmem:[#allocation3 + $0x40] sm:$0xff] %vm37_vm5, %v1700_v60 }
  0xa8   :  { %925 = vadd.xlane.f32.xlu0 %v1977_v36  ;;  %63 = vst.msk [vmem:[#allocation3 + $0x48] sm:$0xff] %vm37_vm5, %v1700_v60 }
  0xa9   :  { %64 = vst.msk [vmem:[#allocation3 + $0x50] sm:$0xff] %vm37_vm5, %v1700_v60 }
  0xaa   :  { %65 = vst.msk [vmem:[#allocation3 + $0x58] sm:$0xff] %vm37_vm5, %v1700_v60 }
  0xab   :  { %66 = vst.msk [vmem:[#allocation3 + $0x60] sm:$0xff] %vm37_vm5, %v1700_v60 }
  0xac   :  { %67 = vst.msk [vmem:[#allocation3 + $0x68] sm:$0xff] %vm37_vm5, %v1700_v60 }
  0xad   :  { %68 = vst.msk [vmem:[#allocation3 + $0x70] sm:$0xff] %vm37_vm5, %v1700_v60 }
  0xae   :  { %69 = vst.msk [vmem:[#allocation3 + $0x78] sm:$0xff] %vm37_vm5, %v1700_v60 }
  0xaf   :  { %70 = vst.msk [vmem:[#allocation4] sm:$0xff] %vm37_vm5, %v1700_v60 }
  0xb0   :  { %899 = vadd.xlane.f32.xlu0 %v1467_v37  ;;  %71 = vst.msk [vmem:[#allocation4 + $0x8] sm:$0xff] %vm37_vm5, %v1700_v60 }
  0xb1   :  { %72 = vst.msk [vmem:[#allocation4 + $0x10] sm:$0xff] %vm37_vm5, %v1700_v60 }
  0xb2   :  { %73 = vst.msk [vmem:[#allocation4 + $0x18] sm:$0xff] %vm37_vm5, %v1700_v60 }
  0xb3   :  { %74 = vst.msk [vmem:[#allocation4 + $0x20] sm:$0xff] %vm37_vm5, %v1700_v60 }
  0xb4   :  { %75 = vst.msk [vmem:[#allocation4 + $0x28] sm:$0xff] %vm37_vm5, %v1700_v60 }
  0xb5   :  { %76 = vst.msk [vmem:[#allocation4 + $0x30] sm:$0xff] %vm37_vm5, %v1700_v60 }
  0xb6   :  { %77 = vst.msk [vmem:[#allocation4 + $0x38] sm:$0xff] %vm37_vm5, %v1700_v60 }
  0xb7   :  { %78 = vst.msk [vmem:[#allocation4 + $0x40] sm:$0xff] %vm37_vm5, %v1700_v60 }
  0xb8   :  { %79 = vst.msk [vmem:[#allocation4 + $0x48] sm:$0xff] %vm37_vm5, %v1700_v60 }
  0xb9   :  { %80 = vst.msk [vmem:[#allocation4 + $0x50] sm:$0xff] %vm37_vm5, %v1700_v60 }
  0xba   :  { %81 = vst.msk [vmem:[#allocation4 + $0x58] sm:$0xff] %vm37_vm5, %v1700_v60 }
  0xbb   :  { %82 = vst.msk [vmem:[#allocation4 + $0x60] sm:$0xff] %vm37_vm5, %v1700_v60 }
  0xbc   :  { %83 = vst.msk [vmem:[#allocation4 + $0x68] sm:$0xff] %vm37_vm5, %v1700_v60 }
  0xbd   :  { %84 = vst.msk [vmem:[#allocation4 + $0x70] sm:$0xff] %vm37_vm5, %v1700_v60 }
  0xbe   :  { %85 = vst.msk [vmem:[#allocation4 + $0x78] sm:$0xff] %vm37_vm5, %v1700_v60 }
  0xbf   :  { %86 = vst.msk [vmem:[#allocation5] sm:$0xff] %vm37_vm5, %v1700_v60 }
  0xc0   :  { %87 = vst.msk [vmem:[#allocation5 + $0x8] sm:$0xff] %vm37_vm5, %v1700_v60 }
  0xc1   :  { %89 = vst.msk [vmem:[#allocation5 + $0x18] sm:$0xff] %vm37_vm5, %v1700_v60 }
  0xc2   :  { %90 = vst.msk [vmem:[#allocation5 + $0x20] sm:$0xff] %vm37_vm5, %v1700_v60 }
  0xc3   :  { %91 = vst.msk [vmem:[#allocation5 + $0x28] sm:$0xff] %vm37_vm5, %v1700_v60 }
  0xc4   :  { %v1986_v38 = vpop.f32.mrf.mxu0  ;;  %92 = vst.msk [vmem:[#allocation5 + $0x30] sm:$0xff] %vm37_vm5, %v1700_v60 }
  0xc5   :  { %v402_v39 = vsel %vm239_vm0, %v1986_v38, -1e+30  ;;  %v803_v40 = vmul.f32 %v1467_v37, %v1986_v38  ;;  %v1992_v41 = vpop.f32.mrf.mxu1  ;;  %93 = vst.msk [vmem:[#allocation5 + $0x38] sm:$0xff] %vm37_vm5, %v1700_v60 }
  0xc6   :  { %418 = vmax.xlane.f32.xlu1 %v402_v39  ;;  %v406_v44 = vsel %vm239_vm0, %v1992_v41, -1e+30  ;;  %v807_v49 = vmul.f32 %v1903_v15, %v1992_v41  ;;  %94 = vst.msk [vmem:[#allocation5 + $0x40] sm:$0xff] %vm37_vm5, %v1700_v60 }
  0xc7   :  { %819 = vadd.xlane.f32.xlu2 %v803_v40  ;;  %95 = vst.msk [vmem:[#allocation5 + $0x48] sm:$0xff] %vm37_vm5, %v1700_v60  ;;  %v884_v21 = vld [vmem:[#allocation5 + $0x8] sm:$0xff] }
  0xc8   :  { %96 = vst.msk [vmem:[#allocation5 + $0x50] sm:$0xff] %vm37_vm5, %v1700_v60  ;;  %v886_v18 = vld [vmem:[#allocation5 + $0x18] sm:$0xff] }
  0xc9   :  { %97 = vst.msk [vmem:[#allocation5 + $0x58] sm:$0xff] %vm37_vm5, %v1700_v60  ;;  %v887_v34 = vld [vmem:[#allocation5 + $0x20] sm:$0xff] }
  0xca   :  { %98 = vst.msk [vmem:[#allocation5 + $0x60] sm:$0xff] %vm37_vm5, %v1700_v60 }
  0xcb   :  { %v1994_v42 = vpop.f32.mrf.mxu2  ;;  %99 = vst.msk [vmem:[#allocation5 + $0x68] sm:$0xff] %vm37_vm5, %v1700_v60  ;;  %v889_v32 = vld [vmem:[#allocation5 + $0x30] sm:$0xff] }
  0xcc   :  { %v1996_v43 = vpop.f32.mrf.mxu3  ;;  %v410_v46 = vsel %vm239_vm0, %v1994_v42, -1e+30  ;;  %v811_v50 = vmul.f32 %v1900_v14, %v1994_v42  ;;  %v2029_v51 = vpop.f32.mrf.mxu0  ;;  %100 = vst.msk [vmem:[#allocation5 + $0x70] sm:$0xff] %vm37_vm5, %v1700_v60 }
  0xcd   :  { %v414_v45 = vsel %vm239_vm0, %v1996_v43, -1e+30  ;;  %v2007_v47 = vpop.f32.mrf.mxu1  ;;  %v804_v55 = vmul.f32 %v1885_v9, %v2029_v51  ;;  %v403_v56 = vsel %vm239_vm0, %v2029_v51, -1e+30  ;;  %101 = vst.msk [vmem:[#allocation5 + $0x78] sm:$0xff] %vm37_vm5, %v1700_v60  ;;  %v891_v29 = vld [vmem:[#allocation5 + $0x40] sm:$0xff] }
  0xce   :  { %442 = vmax.xlane.f32.xlu0 %v414_v45  ;;  %426 = vmax.xlane.f32.xlu1 %v406_v44  ;;  %v808_v48 = vmul.f32 %v1873_v5, %v2007_v47  ;;  %v407_v63 = vsel %vm239_vm0, %v2007_v47, -1e+30  ;;  %v885_v5 = vld [vmem:[#allocation5 + $0x10] sm:$0xff] }
  0xcf   :  { %434 = vmax.xlane.f32.xlu2 %v410_v46 }
  0xd3   :  { %v2035_v52 = vpop.f32.mrf.mxu2 }
  0xd4   :  { %v411_v54 = vsel %vm239_vm0, %v2035_v52, -1e+30  ;;  %v2061_v57 = vpop.f32.mrf.mxu0  ;;  %v2065_v58 = vpop.f32.mrf.mxu3  ;;  %v812_v2 = vmul.f32 %v1933_v25, %v2035_v52  ;;  %v888_v25 = vld [vmem:[#allocation5 + $0x28] sm:$0xff] }
  0xd5   :  { %v404_v59 = vsel %vm239_vm0, %v2061_v57, -1e+30  ;;  %v415_v62 = vsel %vm239_vm0, %v2065_v58, -1e+30  ;;  %v2090_v0 = vpop.f32.mrf.mxu1  ;;  %v805_v10 = vmul.f32 %v1846_v61, %v2061_v57 }
  0xd6   :  { %829 = vadd.xlane.f32.xlu0 %v808_v48  ;;  %827 = vadd.xlane.f32.xlu1 %v807_v49  ;;  %v408_v1 = vsel %vm239_vm0, %v2090_v0, -1e+30  ;;  %v809_v3 = vmul.f32 %v1906_v16, %v2090_v0 }
  0xd7   :  { %835 = vadd.xlane.f32.xlu2 %v811_v50 }
  0xdb   :  { %v2119_v7 = vpop.f32.mrf.mxu2 }
  0xdc   :  { %v2111_v4 = vpop.f32.mrf.mxu3  ;;  %v412_v11 = vsel %vm239_vm0, %v2119_v7, -1e+30  ;;  %v2153_v17 = vpop.f32.mrf.mxu0 }
  0xdd   :  { %v416_v12 = vsel %vm239_vm0, %v2111_v4, -1e+30  ;;  %v2142_v61 = vpop.f32.mrf.mxu1  ;;  %v405_v22 = vsel %vm239_vm0, %v2153_v17, -1e+30  ;;  %v806_v60 = vmul.f32 %v1876_v6, %v2153_v17  ;;  %v892_v6 = vld [vmem:[#allocation5 + $0x48] sm:$0xff] }
  0xde   :  { %436 = vmax.xlane.f32.xlu0 %v411_v54  ;;  %821 = vadd.xlane.f32.xlu1 %v804_v55  ;;  %v409_v20 = vsel %vm239_vm0, %v2142_v61, -1e+30  ;;  %v810_v48 = vmul.f32 %v1930_v24, %v2142_v61  ;;  %v894_v55 = vld [vmem:[#allocation5 + $0x58] sm:$0xff] }
  0xdf   :  { %420 = vmax.xlane.f32.xlu2 %v403_v56 }
  0xe3   :  { %v2183_v54 = vpop.f32.mrf.mxu2 }
  0xe4   :  { %v2144_v13 = vpop.f32.mrf.mxu3  ;;  %v413_v24 = vsel %vm239_vm0, %v2183_v54, -1e+30 }
  0xe5   :  { %v417_v16 = vsel %vm239_vm0, %v2144_v13, -1e+30 }
  0xe6   :  { %422 = vmax.xlane.f32.xlu0 %v404_v59  ;;  %444 = vmax.xlane.f32.xlu1 %v415_v62  ;;  %v890_v62 = vld [vmem:[#allocation5 + $0x38] sm:$0xff] }
  0xe7   :  { %428 = vmax.xlane.f32.xlu2 %v407_v63 }
  0xee   :  { %430 = vmax.xlane.f32.xlu0 %v408_v1  ;;  %837 = vadd.xlane.f32.xlu1 %v812_v2  ;;  %v897_v1 = vld [vmem:[#allocation5 + $0x70] sm:$0xff] }
  0xef   :  { %831 = vadd.xlane.f32.xlu2 %v809_v3 }
  0xf1   :  { %v904_v8 = vpop.xlane.xlu2 %903 }
  0xf2   :  { %v933_v9 = vadd.f32 %v904_v8, %v885_v5 }
  0xf4   :  { %949 = vst.msk [vmem:[#allocation5 + $0x10] sm:$0xff] %vm37_vm5, %v933_v9 }
  0xf6   :  { %823 = vadd.xlane.f32.xlu0 %v805_v10  ;;  %438 = vmax.xlane.f32.xlu1 %v412_v11  ;;  %v895_v10 = vld [vmem:[#allocation5 + $0x60] sm:$0xff]  ;;  %v893_v11 = vld [vmem:[#allocation5 + $0x50] sm:$0xff] }
  0xf7   :  { %446 = vmax.xlane.f32.xlu2 %v416_v12 }
  0xf9   :  { %v910_v14 = vpop.xlane.xlu2 %909 }
  0xfa   :  { %v906_v15 = vpop.xlane.xlu1 %905  ;;  %v936_v26 = vadd.f32 %v910_v14, %v888_v25  ;;  %v898_v14 = vld [vmem:[#allocation5 + $0x78] sm:$0xff]  ;;  %v1701_v25 = vmov -1e+30  }
  0xfb   :  { %v902_v19 = vpop.xlane.xlu0 %901  ;;  %v934_v27 = vadd.f32 %v906_v15, %v886_v18  ;;  %v896_v15 = vld [vmem:[#allocation5 + $0x68] sm:$0xff]  ;;  %38 = vst.msk [vmem:[#allocation2] sm:$0xff] %vm37_vm5, %v1701_v25 }
  0xfc   :  { %v932_v28 = vadd.f32 %v902_v19, %v884_v21  ;;  %952 = vst.msk [vmem:[#allocation5 + $0x28] sm:$0xff] %vm37_vm5, %v936_v26 }
  0xfd   :  { %950 = vst.msk [vmem:[#allocation5 + $0x18] sm:$0xff] %vm37_vm5, %v934_v27 }
  0xfe   :  { %448 = vmax.xlane.f32.xlu0 %v417_v16  ;;  %432 = vmax.xlane.f32.xlu1 %v409_v20  ;;  %948 = vst.msk [vmem:[#allocation5 + $0x8] sm:$0xff] %vm37_vm5, %v932_v28 }
  0xff   :  { %424 = vmax.xlane.f32.xlu2 %v405_v22  ;;  %v883_v22 = vld [vmem:[#allocation5] sm:$0xff]  ;;  %39 = vst.msk [vmem:[#allocation2 + $0x8] sm:$0xff] %vm37_vm5, %v1701_v25 }
 0x100   :  { %40 = vst.msk [vmem:[#allocation2 + $0x10] sm:$0xff] %vm37_vm5, %v1701_v25 }
 0x101   :  { %v916_v37 = vpop.xlane.xlu2 %915  ;;  %41 = vst.msk [vmem:[#allocation2 + $0x18] sm:$0xff] %vm37_vm5, %v1701_v25 }
 0x102   :  { %v912_v39 = vpop.xlane.xlu1 %911  ;;  %v939_v40 = vadd.f32 %v916_v37, %v891_v29  ;;  %42 = vst.msk [vmem:[#allocation2 + $0x20] sm:$0xff] %vm37_vm5, %v1701_v25  ;;  %v2213_v28 = vld [vmem:[#allocation2] sm:$0xff] }
 0x103   :  { %v937_v44 = vadd.f32 %v912_v39, %v889_v32  ;;  %v908_v45 = vpop.xlane.xlu0 %907  ;;  %43 = vst.msk [vmem:[#allocation2 + $0x28] sm:$0xff] %vm37_vm5, %v1701_v25  ;;  %v787_v29 = vld [vmem:[#allocation4] sm:$0xff] }
 0x104   :  { %v935_v46 = vadd.f32 %v908_v45, %v887_v34  ;;  %955 = vst.msk [vmem:[#allocation5 + $0x40] sm:$0xff] %vm37_vm5, %v939_v40 }
 0x105   :  { %953 = vst.msk [vmem:[#allocation5 + $0x30] sm:$0xff] %vm37_vm5, %v937_v44 }
 0x106   :  { %833 = vadd.xlane.f32.xlu1 %v810_v48  ;;  %951 = vst.msk [vmem:[#allocation5 + $0x20] sm:$0xff] %vm37_vm5, %v935_v46 }
 0x107   :  { %825 = vadd.xlane.f32.xlu2 %v806_v60  ;;  %44 = vst.msk [vmem:[#allocation2 + $0x30] sm:$0xff] %vm37_vm5, %v1701_v25 }
 0x108   :  { %45 = vst.msk [vmem:[#allocation2 + $0x38] sm:$0xff] %vm37_vm5, %v1701_v25 }
 0x109   :  { %v922_v49 = vpop.xlane.xlu2 %921  ;;  %46 = vst.msk [vmem:[#allocation2 + $0x40] sm:$0xff] %vm37_vm5, %v1701_v25  ;;  %v2226_v45 = vld [vmem:[#allocation2 + $0x20] sm:$0xff] }
 0x10a   :  { %v918_v50 = vpop.xlane.xlu1 %917  ;;  %v942_v59 = vadd.f32 %v922_v49, %v894_v55  ;;  %47 = vst.msk [vmem:[#allocation2 + $0x48] sm:$0xff] %vm37_vm5, %v1701_v25 }
 0x10b   :  { %v914_v56 = vpop.xlane.xlu0 %913  ;;  %v940_v5 = vadd.f32 %v918_v50, %v892_v6  ;;  %48 = vst.msk [vmem:[#allocation2 + $0x50] sm:$0xff] %vm37_vm5, %v1701_v25 }
 0x10c   :  { %958 = vst.msk [vmem:[#allocation5 + $0x58] sm:$0xff] %vm37_vm5, %v942_v59  ;;  %v938_v8 = vadd.f32 %v914_v56, %v890_v62  ;;  %v792_v62 = vld [vmem:[#allocation4 + $0x28] sm:$0xff] }
 0x10d   :  { %956 = vst.msk [vmem:[#allocation5 + $0x48] sm:$0xff] %vm37_vm5, %v940_v5 }
 0x10e   :  { %954 = vst.msk [vmem:[#allocation5 + $0x38] sm:$0xff] %vm37_vm5, %v938_v8 }
 0x10f   :  { %440 = vmax.xlane.f32.xlu2 %v413_v24  ;;  %49 = vst.msk [vmem:[#allocation2 + $0x58] sm:$0xff] %vm37_vm5, %v1701_v25 }
 0x110   :  { %50 = vst.msk [vmem:[#allocation2 + $0x60] sm:$0xff] %vm37_vm5, %v1701_v25  ;;  %v2228_v48 = vld [vmem:[#allocation2 + $0x40] sm:$0xff] }
 0x111   :  { %v928_v63 = vpop.xlane.xlu2 %927  ;;  %51 = vst.msk [vmem:[#allocation2 + $0x68] sm:$0xff] %vm37_vm5, %v1701_v25 }
 0x112   :  { %v924_v2 = vpop.xlane.xlu1 %923  ;;  %v945_v9 = vadd.f32 %v928_v63, %v897_v1  ;;  %52 = vst.msk [vmem:[#allocation2 + $0x70] sm:$0xff] %vm37_vm5, %v1701_v25  ;;  %v791_v63 = vld [vmem:[#allocation4 + $0x20] sm:$0xff] }
 0x113   :  { %v920_v3 = vpop.xlane.xlu0 %919  ;;  %v943_v16 = vadd.f32 %v924_v2, %v895_v10  ;;  %53 = vst.msk [vmem:[#allocation2 + $0x78] sm:$0xff] %vm37_vm5, %v1701_v25  ;;  %v795_v2 = vld [vmem:[#allocation4 + $0x40] sm:$0xff] }
 0x114   :  { %961 = vst.msk [vmem:[#allocation5 + $0x70] sm:$0xff] %vm37_vm5, %v945_v9  ;;  %v941_v18 = vadd.f32 %v920_v3, %v893_v11  ;;  %v2257_v11 = vld [vmem:[#allocation2 + $0x48] sm:$0xff] }
 0x115   :  { %959 = vst.msk [vmem:[#allocation5 + $0x60] sm:$0xff] %vm37_vm5, %v943_v16 }
 0x116   :  { %957 = vst.msk [vmem:[#allocation5 + $0x50] sm:$0xff] %vm37_vm5, %v941_v18 }
 0x117   :  { %v2224_v44 = vld [vmem:[#allocation2 + $0x60] sm:$0xff] }
 0x11a   :  { %v930_v12 = vpop.xlane.xlu1 %929 }
 0x11b   :  { %v926_v19 = vpop.xlane.xlu0 %925  ;;  %v946_v20 = vadd.f32 %v930_v12, %v898_v14  ;;  %v788_v12 = vld [vmem:[#allocation4 + $0x8] sm:$0xff] }
 0x11c   :  { %v944_v21 = vadd.f32 %v926_v19, %v896_v15  ;;  %v2259_v15 = vld [vmem:[#allocation2 + $0x8] sm:$0xff] }
 0x11d   :  { %962 = vst.msk [vmem:[#allocation5 + $0x78] sm:$0xff] %vm37_vm5, %v946_v20 }
 0x11e   :  { %960 = vst.msk [vmem:[#allocation5 + $0x68] sm:$0xff] %vm37_vm5, %v944_v21  ;;  %v2373_v21 = vld [vmem:[#allocation2 + $0x58] sm:$0xff] }
 0x123   :  { %v900_v26 = vpop.xlane.xlu0 %899 }
 0x124   :  { %v931_v27 = vadd.f32 %v900_v26, %v883_v22  ;;  %v2278_v26 = vld [vmem:[#allocation2 + $0x10] sm:$0xff] }
 0x126   :  { %947 = vst.msk [vmem:[#allocation5] sm:$0xff] %vm37_vm5, %v931_v27  ;;  %v2280_v27 = vld [vmem:[#allocation2 + $0x68] sm:$0xff] }
 0x139   :  { %v419_v32 = vpop.xlane.xlu1 %418 }
 0x13a   :  { %v2216_v34 = vmax.f32 %v2213_v28, %v419_v32  ;;  %v820_v37 = vpop.xlane.xlu2 %819  ;;  %v2282_v32 = vld [vmem:[#allocation2 + $0x28] sm:$0xff] }
 0x13b   :  { %v851_v39 = vadd.f32 %v820_v37, %v787_v29 }
 0x13c   :  { %771 = vst.msk [vmem:[#allocation2] sm:$0xff] %vm37_vm5, %v2216_v34  ;;  %484 = vperm.xlu1 %1538, %v2216_v34  }
 0x13d   :  { %867 = vst.msk [vmem:[#allocation4] sm:$0xff] %vm37_vm5, %v851_v39 }
 0x141   :  { %v443_v46 = vpop.xlane.xlu0 %442  ;;  %v427_v49 = vpop.xlane.xlu1 %426 }
 0x142   :  { %v2231_v60 = vmax.f32 %v2224_v44, %v443_v46  ;;  %v2234_v50 = vmax.f32 %v2226_v45, %v427_v49  ;;  %v435_v55 = vpop.xlane.xlu2 %434 }
 0x143   :  { %v2241_v24 = vmax.f32 %v2228_v48, %v435_v55 }
 0x144   :  { %783 = vst.msk [vmem:[#allocation2 + $0x60] sm:$0xff] %vm37_vm5, %v2231_v60  ;;  %504 = vperm.xlu0 %1537, %v2234_v50   ;;  %544 = vperm.xlu1 %1538, %v2231_v60  }
 0x145   :  { %775 = vst.msk [vmem:[#allocation2 + $0x20] sm:$0xff] %vm37_vm5, %v2234_v50  ;;  %524 = vperm.xlu2 %1539, %v2241_v24   ;;  %v3190_v53 = vsub.f32 %v2228_v48, %v2241_v24 }
 0x146   :  { %779 = vst.msk [vmem:[#allocation2 + $0x40] sm:$0xff] %vm37_vm5, %v2241_v24  ;;  %v2460_v24 = vld [vmem:[#allocation5 + $0x28] sm:$0xff] }
 0x149   :  { %v830_v1 = vpop.xlane.xlu0 %829  ;;  %v828_v5 = vpop.xlane.xlu1 %827 }
 0x14a   :  { %v856_v3 = vadd.f32 %v830_v1, %v792_v62  ;;  %v855_v8 = vadd.f32 %v828_v5, %v791_v63  ;;  %v836_v9 = vpop.xlane.xlu2 %835 }
 0x14b   :  { %v859_v10 = vadd.f32 %v836_v9, %v795_v2  ;;  %v2307_v2 = vld [vmem:[#allocation2 + $0x30] sm:$0xff] }
 0x14c   :  { %872 = vst.msk [vmem:[#allocation4 + $0x28] sm:$0xff] %vm37_vm5, %v856_v3  ;;  %v796_v3 = vld [vmem:[#allocation4 + $0x48] sm:$0xff] }
 0x14d   :  { %871 = vst.msk [vmem:[#allocation4 + $0x20] sm:$0xff] %vm37_vm5, %v855_v8  ;;  %v793_v8 = vld [vmem:[#allocation4 + $0x30] sm:$0xff] }
 0x14e   :  { %875 = vst.msk [vmem:[#allocation4 + $0x40] sm:$0xff] %vm37_vm5, %v859_v10 }
 0x151   :  { %v437_v14 = vpop.xlane.xlu0 %436  ;;  %v822_v18 = vpop.xlane.xlu1 %821 }
 0x152   :  { %v2262_v16 = vmax.f32 %v2257_v11, %v437_v14  ;;  %v852_v19 = vadd.f32 %v822_v18, %v788_v12  ;;  %v421_v20 = vpop.xlane.xlu2 %420 }
 0x153   :  { %v2269_v22 = vmax.f32 %v2259_v15, %v421_v20  ;;  %v789_v20 = vld [vmem:[#allocation4 + $0x10] sm:$0xff] }
 0x154   :  { %780 = vst.msk [vmem:[#allocation2 + $0x48] sm:$0xff] %vm37_vm5, %v2262_v16  ;;  %529 = vperm.xlu1 %1538, %v2262_v16  }
 0x155   :  { %868 = vst.msk [vmem:[#allocation4 + $0x8] sm:$0xff] %vm37_vm5, %v852_v19  ;;  %489 = vperm.xlu2 %1539, %v2269_v22  }
 0x156   :  { %772 = vst.msk [vmem:[#allocation2 + $0x8] sm:$0xff] %vm37_vm5, %v2269_v22 }
 0x159   :  { %v423_v29 = vpop.xlane.xlu0 %422  ;;  %v445_v39 = vpop.xlane.xlu1 %444 }
 0x15a   :  { %v2285_v37 = vmax.f32 %v2278_v26, %v423_v29  ;;  %v2288_v46 = vmax.f32 %v2280_v27, %v445_v39  ;;  %v429_v49 = vpop.xlane.xlu2 %428  ;;  %v2320_v29 = vld [vmem:[#allocation2 + $0x50] sm:$0xff] }
 0x15b   :  { %v2295_v62 = vmax.f32 %v2282_v32, %v429_v49  ;;  %v2322_v49 = vld [vmem:[#allocation2 + $0x70] sm:$0xff] }
 0x15c   :  { %773 = vst.msk [vmem:[#allocation2 + $0x10] sm:$0xff] %vm37_vm5, %v2285_v37  ;;  %549 = vperm.xlu0 %1537, %v2288_v46  }
 0x15d   :  { %784 = vst.msk [vmem:[#allocation2 + $0x68] sm:$0xff] %vm37_vm5, %v2288_v46  ;;  %509 = vperm.xlu2 %1539, %v2295_v62  }
 0x15e   :  { %776 = vst.msk [vmem:[#allocation2 + $0x28] sm:$0xff] %vm37_vm5, %v2295_v62 }
 0x161   :  { %v431_v5 = vpop.xlane.xlu0 %430  ;;  %v838_v10 = vpop.xlane.xlu1 %837 }
 0x162   :  { %v2310_v9 = vmax.f32 %v2307_v2, %v431_v5  ;;  %v860_v12 = vadd.f32 %v838_v10, %v796_v3  ;;  %v832_v14 = vpop.xlane.xlu2 %831 }
 0x163   :  { %v857_v19 = vadd.f32 %v832_v14, %v793_v8 }
 0x164   :  { %777 = vst.msk [vmem:[#allocation2 + $0x30] sm:$0xff] %vm37_vm5, %v2310_v9  ;;  %514 = vperm.xlu1 %1538, %v2310_v9   ;;  %494 = vperm.xlu0 %1537, %v2285_v37  }
 0x165   :  { %876 = vst.msk [vmem:[#allocation4 + $0x48] sm:$0xff] %vm37_vm5, %v860_v12 }
 0x166   :  { %873 = vst.msk [vmem:[#allocation4 + $0x30] sm:$0xff] %vm37_vm5, %v857_v19 }
 0x169   :  { %v824_v39 = vpop.xlane.xlu0 %823  ;;  %v439_v5 = vpop.xlane.xlu1 %438 }
 0x16a   :  { %v853_v3 = vadd.f32 %v824_v39, %v789_v20  ;;  %v2325_v10 = vmax.f32 %v2320_v29, %v439_v5  ;;  %v447_v8 = vpop.xlane.xlu2 %446  ;;  %v2341_v20 = vld [vmem:[#allocation2 + $0x78] sm:$0xff] }
 0x16b   :  { %v2329_v12 = vmax.f32 %v2322_v49, %v447_v8  ;;  %3185 = vst [vmem:[#allocation9_spill] sm:$0xff] %v2341_v20  ;;  %v2343_v39 = vld [vmem:[#allocation2 + $0x38] sm:$0xff] }
 0x16c   :  { %869 = vst.msk [vmem:[#allocation4 + $0x10] sm:$0xff] %vm37_vm5, %v853_v3  ;;  %534 = vperm.xlu0 %1537, %v2325_v10   ;;  %v2345_v3 = vld [vmem:[#allocation2 + $0x18] sm:$0xff] }
 0x16d   :  { %781 = vst.msk [vmem:[#allocation2 + $0x50] sm:$0xff] %vm37_vm5, %v2325_v10  ;;  %554 = vperm.xlu2 %1539, %v2329_v12  }
 0x16e   :  { %785 = vst.msk [vmem:[#allocation2 + $0x70] sm:$0xff] %vm37_vm5, %v2329_v12 }
 0x16f   :  { %3186 = vst [vmem:[#allocation10_spill] sm:$0xff] %v2345_v3 }
 0x171   :  { %v449_v5 = vpop.xlane.xlu0 %448  ;;  %v433_v8 = vpop.xlane.xlu1 %432 }
 0x172   :  { %v2348_v14 = vmax.f32 %v2341_v20, %v449_v5  ;;  %v2351_v55 = vmax.f32 %v2343_v39, %v433_v8  ;;  %v425_v19 = vpop.xlane.xlu2 %424  ;;  %v790_v8 = vld [vmem:[#allocation4 + $0x18] sm:$0xff] }
 0x173   :  { %v2354_v18 = vmax.f32 %v2345_v3, %v425_v19  ;;  %v794_v19 = vld [vmem:[#allocation4 + $0x38] sm:$0xff] }
 0x174   :  { %3187 = vst [vmem:[#allocation11_spill] sm:$0xff] %v2348_v14  ;;  %519 = vperm.xlu0 %1537, %v2351_v55  }
 0x175   :  { %3188 = vst [vmem:[#allocation12_spill] sm:$0xff] %v2354_v18  ;;  %499 = vperm.xlu1 %1538, %v2354_v18  }
 0x176   :  { %786 = vst.msk [vmem:[#allocation2 + $0x78] sm:$0xff] %vm37_vm5, %v2348_v14 }
 0x177   :  { %778 = vst.msk [vmem:[#allocation2 + $0x38] sm:$0xff] %vm37_vm5, %v2351_v55 }
 0x178   :  { %774 = vst.msk [vmem:[#allocation2 + $0x18] sm:$0xff] %vm37_vm5, %v2354_v18 }
 0x179   :  { %v834_v63 = vpop.xlane.xlu1 %833 }
 0x17a   :  { %v858_v25 = vadd.f32 %v834_v63, %v794_v19  ;;  %v826_v1 = vpop.xlane.xlu2 %825 }
 0x17b   :  { %v854_v56 = vadd.f32 %v826_v1, %v790_v8 }
 0x17c   :  { %874 = vst.msk [vmem:[#allocation4 + $0x38] sm:$0xff] %vm37_vm5, %v858_v25 }
 0x17d   :  { %870 = vst.msk [vmem:[#allocation4 + $0x18] sm:$0xff] %vm37_vm5, %v854_v56  ;;  %559 = vperm.xlu1 %1538, %v2348_v14  }
 0x182   :  { %v441_v5 = vpop.xlane.xlu2 %440 }
 0x183   :  { %v2376_v59 = vmax.f32 %v2373_v21, %v441_v5 }
 0x185   :  { %3189 = vst [vmem:[#allocation13_spill] sm:$0xff] %v2376_v59  ;;  %539 = vperm.xlu2 %1539, %v2376_v59  }
 0x186   :  { %782 = vst.msk [vmem:[#allocation2 + $0x58] sm:$0xff] %vm37_vm5, %v2376_v59 }
 0x19f   :  { %v525_v63 = vpop.permute.xlu2 %524 }
 0x1a0   :  { %v570_v25 = vsub.f32 %v1994_v42, %v525_v63 }
 0x1a2   :  { %v594_v56 = vmul.f32 1.442695, %v570_v25 }
 0x1a4   :  { %1541 = vpow2.f32 %v594_v56 }
 0x1aa   :  { %v1542_v1 = vpop.eup %1541 }
 0x1ab   :  { %v618_v19 = vsel %vm239_vm0, %v1542_v1, 0.0 }
 0x1ac   :  { %722 = vadd.xlane.f32.xlu1 %v618_v19 }
 0x1ae   :  { %v485_v5 = vpop.permute.xlu1 %484 }
 0x1af   :  { %v562_v8 = vsub.f32 %v1986_v38, %v485_v5  ;;  %v490_v6 = vpop.permute.xlu2 %489 }
 0x1b0   :  { %v563_v56 = vsub.f32 %v2029_v51, %v490_v6 }
 0x1b1   :  { %v578_v40 = vmul.f32 1.442695, %v562_v8 }
 0x1b3   :  { %1543 = vpow2.f32 %v578_v40  ;;  %v580_v40 = vmul.f32 1.442695, %v563_v56 }
 0x1b6   :  { %v505_v14 = vpop.permute.xlu0 %504  ;;  %v545_v20 = vpop.permute.xlu1 %544 }
 0x1b7   :  { %v566_v18 = vsub.f32 %v1992_v41, %v505_v14  ;;  %v574_v3 = vsub.f32 %v1996_v43, %v545_v20  ;;  %v510_v42 = vpop.permute.xlu2 %509 }
 0x1b8   :  { %v567_v63 = vsub.f32 %v2007_v47, %v510_v42 }
 0x1b9   :  { %v1544_v25 = vpop.eup %1543  ;;  %v586_v1 = vmul.f32 1.442695, %v566_v18  ;;  %v602_v19 = vmul.f32 1.442695, %v574_v3 }
 0x1ba   :  { %v588_v59 = vmul.f32 1.442695, %v567_v63  ;;  %v610_v38 = vsel %vm239_vm0, %v1544_v25, 0.0 }
 0x1bb   :  { %1545 = vpow2.f32 %v586_v1  ;;  %706 = vadd.xlane.f32.xlu0 %v610_v38 }
 0x1bc   :  { %1547 = vpow2.f32 %v602_v19 }
 0x1bd   :  { %1549 = vpow2.f32 %v588_v59 }
 0x1be   :  { %1551 = vpow2.f32 %v580_v40 }
 0x1c1   :  { %v1546_v41 = vpop.eup %1545 }
 0x1c2   :  { %v1548_v14 = vpop.eup %1547  ;;  %v614_v47 = vsel %vm239_vm0, %v1546_v41, 0.0 }
 0x1c3   :  { %v1550_v20 = vpop.eup %1549  ;;  %714 = vadd.xlane.f32.xlu2 %v614_v47  ;;  %v622_v51 = vsel %vm239_vm0, %v1548_v14, 0.0 }
 0x1c4   :  { %730 = vadd.xlane.f32.xlu0 %v622_v51  ;;  %v615_v6 = vsel %vm239_vm0, %v1550_v20, 0.0  ;;  %v1552_v59 = vpop.eup %1551 }
 0x1c5   :  { %716 = vadd.xlane.f32.xlu1 %v615_v6  ;;  %v611_v8 = vsel %vm239_vm0, %v1552_v59, 0.0 }
 0x1c6   :  { %v530_v18 = vpop.permute.xlu1 %529 }
 0x1c7   :  { %v571_v3 = vsub.f32 %v2035_v52, %v530_v18  ;;  %v555_v38 = vpop.permute.xlu2 %554 }
 0x1c8   :  { %v576_v20 = vsub.f32 %v2111_v4, %v555_v38 }
 0x1c9   :  { %v596_v5 = vmul.f32 1.442695, %v571_v3 }
 0x1ca   :  { %v606_v18 = vmul.f32 1.442695, %v576_v20 }
 0x1cb   :  { %1553 = vpow2.f32 %v596_v5  ;;  %708 = vadd.xlane.f32.xlu2 %v611_v8 }
 0x1ce   :  { %v550_v42 = vpop.permute.xlu0 %549 }
 0x1cf   :  { %v575_v63 = vsub.f32 %v2065_v58, %v550_v42 }
 0x1d1   :  { %v1554_v25 = vpop.eup %1553  ;;  %v604_v56 = vmul.f32 1.442695, %v575_v63 }
 0x1d2   :  { %v619_v1 = vsel %vm239_vm0, %v1554_v25, 0.0 }
 0x1d3   :  { %724 = vadd.xlane.f32.xlu0 %v619_v1  ;;  %1555 = vpow2.f32 %v604_v56 }
 0x1d6   :  { %v515_v19 = vpop.permute.xlu1 %514  ;;  %v495_v40 = vpop.permute.xlu0 %494 }
 0x1d7   :  { %v568_v52 = vsub.f32 %v2090_v0, %v515_v19  ;;  %v564_v41 = vsub.f32 %v2061_v57, %v495_v40 }
 0x1d9   :  { %v590_v14 = vmul.f32 1.442695, %v568_v52  ;;  %v1556_v47 = vpop.eup %1555  ;;  %v582_v51 = vmul.f32 1.442695, %v564_v41 }
 0x1da   :  { %v623_v6 = vsel %vm239_vm0, %v1556_v47, 0.0 }
 0x1db   :  { %1557 = vpow2.f32 %v590_v14  ;;  %732 = vadd.xlane.f32.xlu2 %v623_v6 }
 0x1dc   :  { %1559 = vpow2.f32 %v582_v51 }
 0x1dd   :  { %1561 = vpow2.f32 %v606_v18 }
 0x1de   :  { %v535_v3 = vpop.permute.xlu0 %534 }
 0x1df   :  { %v572_v59 = vsub.f32 %v2119_v7, %v535_v3  ;;  %v540_v5 = vpop.permute.xlu2 %539 }
 0x1e0   :  { %v573_v42 = vsub.f32 %v2183_v54, %v540_v5 }
 0x1e1   :  { %v1558_v0 = vpop.eup %1557  ;;  %v598_v57 = vmul.f32 1.442695, %v572_v59 }
 0x1e2   :  { %v1560_v8 = vpop.eup %1559  ;;  %v616_v63 = vsel %vm239_vm0, %v1558_v0, 0.0  ;;  %v600_v56 = vmul.f32 1.442695, %v573_v42  ;;  %v815_v42 = vmul.f32 %v1959_v33, %v1996_v43  ;;  %v674_v33 = vmul.f32 1.442695, %v3190_v53  ;;  %v2446_v43 = vld [vmem:[#allocation5 + $0x40] sm:$0xff] }
 0x1e3   :  { %718 = vadd.xlane.f32.xlu0 %v616_v63  ;;  %v612_v25 = vsel %vm239_vm0, %v1560_v8, 0.0  ;;  %1563 = vpow2.f32 %v598_v57  ;;  %v1562_v19 = vpop.eup %1561  ;;  %v814_v57 = vmul.f32 %v1927_v23, %v2183_v54  ;;  %v816_v23 = vmul.f32 %v1977_v36, %v2065_v58 }
 0x1e4   :  { %710 = vadd.xlane.f32.xlu1 %v612_v25  ;;  %1565 = vpow2.f32 %v600_v56  ;;  %v624_v51 = vsel %vm239_vm0, %v1562_v19, 0.0  ;;  %v817_v56 = vmul.f32 %v1952_v30, %v2111_v4  ;;  %v813_v19 = vmul.f32 %v1955_v31, %v2119_v7  ;;  %v634_v4 = vld [vmem:[#allocation3 + $0x40] sm:$0xff]  ;;  %v2451_v31 = vld [vmem:[#allocation5 + $0x10] sm:$0xff] }
 0x1e5   :  { %v2449_v30 = vmax.f32 %v2446_v43, 1.0  ;;  %3191 = vst [vmem:[#allocation14_spill] sm:$0xff] %v2451_v31  ;;  %v2455_v36 = vmax.f32 %v2451_v31, 1.0  ;;  %v3196_v53 = vsub.f32 %v2259_v15, %v2269_v22 }
 0x1e6   :  { %v520_v1 = vpop.permute.xlu0 %519 }
 0x1e7   :  { %v569_v38 = vsub.f32 %v2142_v61, %v520_v1  ;;  %v500_v52 = vpop.permute.xlu1 %499  ;;  %v818_v1 = vmul.f32 %v1972_v35, %v2144_v13 }
 0x1e8   :  { %v565_v40 = vsub.f32 %v2153_v17, %v500_v52  ;;  %v2466_v52 = vld [vmem:[#allocation5] sm:$0xff] }
 0x1e9   :  { %v1564_v41 = vpop.eup %1563  ;;  %v592_v14 = vmul.f32 1.442695, %v569_v38 }
 0x1ea   :  { %v584_v47 = vmul.f32 1.442695, %v565_v40  ;;  %v620_v20 = vsel %vm239_vm0, %v1564_v41, 0.0  ;;  %v1566_v6 = vpop.eup %1565  ;;  %v2469_v40 = vmax.f32 %v2460_v24, 1.0 }
 0x1eb   :  { %1567 = vpow2.f32 %v592_v14  ;;  %726 = vadd.xlane.f32.xlu2 %v620_v20  ;;  %v621_v0 = vsel %vm239_vm0, %v1566_v6, 0.0  ;;  %v3193_v14 = vsub.f32 %v2226_v45, %v2234_v50  ;;  %v626_v45 = vld [vmem:[#allocation3] sm:$0xff] }
 0x1ec   :  { %734 = vadd.xlane.f32.xlu1 %v624_v51  ;;  %1569 = vpow2.f32 %v584_v47  ;;  %v3194_v51 = vsub.f32 %v2224_v44, %v2231_v60  ;;  %v2497_v60 = vld [vmem:[#allocation5 + $0x20] sm:$0xff]  ;;  %vm1270_vm9 = vweird.f32 %v2469_v40 }
 0x1ed   :  { %v666_v47 = vmul.f32 1.442695, %v3193_v14  ;;  %v638_v14 = vld [vmem:[#allocation3 + $0x60] sm:$0xff] }
 0x1ee   :  { %v682_v6 = vmul.f32 1.442695, %v3194_v51 }
 0x1ef   :  { %v560_v18 = vpop.permute.xlu1 %559 }
 0x1f0   :  { %v577_v61 = vsub.f32 %v2144_v13, %v560_v18  ;;  %v3192_v13 = vsub.f32 %v2213_v28, %v2216_v34  ;;  %v2474_v28 = vmax.f32 %v2466_v52, 1.0  ;;  %v1097_v34 = vld [vmem:[#allocation5 + $0x18] sm:$0xff] }
 0x1f1   :  { %v1568_v3 = vpop.eup %1567  ;;  %v2490_v50 = vmax.f32 %v1097_v34, 1.0 }
 0x1f2   :  { %v1570_v17 = vpop.eup %1569  ;;  %v608_v59 = vmul.f32 1.442695, %v577_v61  ;;  %v617_v5 = vsel %vm239_vm0, %v1568_v3, 0.0  ;;  %v658_v54 = vmul.f32 1.442695, %v3192_v13  ;;  %v2485_v3 = vld [vmem:[#allocation5 + $0x8] sm:$0xff]  ;;  %vm1195_vm13 = vweird.f32 %v2474_v28 }
 0x1f3   :  { %720 = vadd.xlane.f32.xlu2 %v617_v5  ;;  %v613_v8 = vsel %vm239_vm0, %v1570_v17, 0.0 }
 0x1f4   :  { %728 = vadd.xlane.f32.xlu1 %v621_v0  ;;  %1571 = vpow2.f32 %v608_v59  ;;  %712 = vadd.xlane.f32.xlu0 %v613_v8  ;;  %v3195_v59 = vsub.f32 %v2282_v32, %v2295_v62  ;;  %v2492_v0 = vld [vmem:[#allocation5 + $0x30] sm:$0xff]  ;;  %v2500_v8 = vmax.f32 %v2485_v3, 1.0 }
 0x1f5   :  { %1573 = vpow2.f32 %v674_v33  ;;  %v660_v33 = vmul.f32 1.442695, %v3196_v53 }
 0x1f6   :  { %1575 = vrcp.f32 %v2449_v30  ;;  %v668_v5 = vmul.f32 1.442695, %v3195_v59  ;;  %vm1210_vm14 = vweird.f32 %v2500_v8 }
 0x1f7   :  { %1577 = vrcp.f32 %v2455_v36 }
 0x1f8   :  { %1579 = vpow2.f32 %v658_v54  ;;  %v1321_v54 = vand.u32 2147483648, %v2449_v30 }
 0x1f9   :  { %1581 = vrcp.f32 %v2469_v40 }
 0x1fa   :  { %v1572_v63 = vpop.eup %1571 }
 0x1fb   :  { %841 = vadd.xlane.f32.xlu2 %v814_v57  ;;  %v625_v25 = vsel %vm239_vm0, %v1572_v63, 0.0  ;;  %v1574_v35 = vpop.eup %1573  ;;  %v2504_v57 = vmax.f32 %v2492_v0, 1.0  ;;  %vm1315_vm0 = vweird.f32 %v2449_v30 }
 0x1fc   :  { %843 = vadd.xlane.f32.xlu1 %v815_v42  ;;  %736 = vadd.xlane.f32.xlu0 %v625_v25  ;;  %v698_v7 = vmul.f32 %v1574_v35, %v634_v4  ;;  %v2463_v38 = vpop.eup %1575  ;;  %v1231_v25 = vand.u32 2147483648, %v2455_v36  ;;  %v1319_v4 = vand.u32 2147483647, %v2449_v30 }
 0x1fd   :  { %v1311_v41 = vmul.f32 %v2463_v38, %v2449_v30  ;;  %v2479_v20 = vpop.eup %1577  ;;  %vm1316_vm6 = vweird.f32 %v2463_v38 }
 0x1fe   :  { %v1580_v61 = vpop.eup %1579  ;;  %v1221_v44 = vmul.f32 %v2479_v20, %v2455_v36  ;;  %vm2528_vm7 = vmor %vm1315_vm0, %vm1316_vm6  ;;  %vm2541_vm8 = vcmp.eq.f32.partialorder %v1319_v4, 8.507059e+37 }
 0x1ff   :  { %v1312_v17 = vsub.f32 1.0, %v1311_v41  ;;  %v690_v32 = vmul.f32 %v1580_v61, %v626_v45  ;;  %v2506_v63 = vpop.eup %1581  ;;  %v630_v41 = vld [vmem:[#allocation3 + $0x20] sm:$0xff]  ;;  %v631_v61 = vld [vmem:[#allocation3 + $0x28] sm:$0xff] }
 0x200   :  { %v1266_v30 = vmul.f32 %v2506_v63, %v2469_v40  ;;  %vm1271_vm10 = vweird.f32 %v2506_v63 }
 0x201   :  { %v1313_v62 = vmul.f32 %v2463_v38, %v1312_v17 }
 0x203   :  { %847 = vadd.xlane.f32.xlu2 %v817_v56  ;;  %v2511_v56 = vmax.f32 %v2497_v60, 1.0  ;;  %v1314_v13 = vadd.f32 %v2463_v38, %v1313_v62  ;;  %v1118_v62 = vld [vmem:[#allocation4 + $0x40] sm:$0xff] }
 0x204   :  { %849 = vadd.xlane.f32.xlu1 %v818_v1  ;;  %839 = vadd.xlane.f32.xlu0 %v813_v19 }
 0x205   :  { %vm1255_vm11 = vweird.f32 %v2511_v56 }
 0x20c   :  { %845 = vadd.xlane.f32.xlu0 %v816_v23  ;;  %v1222_v23 = vsub.f32 1.0, %v1221_v44  ;;  %v1322_v44 = vor.u32 1.1754944e-38, %v1321_v54  ;;  %v3206_v54 = vsub.f32 %v2278_v26, %v2285_v37  ;;  %v1018_v37 = vld [vmem:[#allocation2 + $0x20] sm:$0xff] }
 0x20e   :  { %v1223_v51 = vmul.f32 %v2479_v20, %v1222_v23  ;;  %v3201_v23 = vsub.f32 %v2257_v11, %v2262_v16  ;;  %v2567_v16 = vld [vmem:[#allocation5 + $0x48] sm:$0xff]  ;;  %v662_v31 = vmul.f32 1.442695, %v3206_v54 }
 0x210   :  { %v676_v53 = vmul.f32 1.442695, %v3201_v23  ;;  %v2565_v11 = vadd.f32 %v2479_v20, %v1223_v51  ;;  %v627_v51 = vld [vmem:[#allocation3 + $0x8] sm:$0xff] }
 0x21f   :  { %v723_v58 = vpop.xlane.xlu1 %722 }
 0x220   :  { %v746_v48 = vadd.f32 %v723_v58, %v698_v7 }
 0x222   :  { %763 = vst.msk [vmem:[#allocation3 + $0x40] sm:$0xff] %vm37_vm5, %v746_v48  ;;  %v1022_v48 = vld [vmem:[#allocation2 + $0x40] sm:$0xff] }
 0x229   :  { %v1038_v18 = vld [vmem:[#allocation3 + $0x40] sm:$0xff] }
 0x22a   :  { %1583 = vlog2.f32 %v1038_v18  ;;  %v2535_v18 = vor.u32 1.1754944e-38, %v1231_v25 }
 0x22b   :  { %1585 = vrcp.f32 %v2474_v28 }
 0x22c   :  { %1587 = vpow2.f32 %v666_v47 }
 0x22d   :  { %1589 = vpow2.f32 %v682_v6 }
 0x22e   :  { %1591 = vpow2.f32 %v668_v5  ;;  %v707_v42 = vpop.xlane.xlu0 %706 }
 0x22f   :  { %1593 = vrcp.f32 %v2490_v50  ;;  %v738_v1 = vadd.f32 %v707_v42, %v690_v32  ;;  %v1318_v42 = vsel %vm2528_vm7, %v2463_v38, %v1314_v13  ;;  %vm2688_vm7 = vmor %vm1270_vm9, %vm1271_vm10 }
 0x230   :  { %v1584_v19 = vpop.eup %1583  ;;  %1595 = vrcp.f32 %v2500_v8 }
 0x231   :  { %v2518_v35 = vpop.eup %1585  ;;  %v1063_v7 = vmul.f32 0.6931472, %v1584_v19  ;;  %755 = vst.msk [vmem:[#allocation3] sm:$0xff] %vm37_vm5, %v738_v1  ;;  %1597 = vrcp.f32 %v2504_v57 }
 0x232   :  { %v1588_v58 = vpop.eup %1587  ;;  %1599 = vrcp.f32 %v2511_v56  ;;  %v1191_v32 = vmul.f32 %v2518_v35, %v2474_v28  ;;  %vm1196_vm12 = vweird.f32 %v2518_v35 }
 0x233   :  { %v1590_v15 = vpop.eup %1589  ;;  %v1086_v34 = vadd.f32 %v1063_v7, %v1022_v48  ;;  %1601 = vpow2.f32 %v660_v33  ;;  %v694_v45 = vmul.f32 %v1588_v58, %v630_v41  ;;  %v1276_v48 = vand.u32 2147483648, %v2469_v40  ;;  %vm2630_vm1 = vmor %vm1195_vm13, %vm1196_vm12 }
 0x234   :  { %v1592_v47 = vpop.eup %1591  ;;  %v702_v1 = vmul.f32 %v1590_v15, %v638_v14  ;;  %vm1240_vm13 = vweird.f32 %v2490_v50 }
 0x235   :  { %v2537_v17 = vpop.eup %1593  ;;  %v1134_v5 = vmul.f32 %v2446_v43, %v1086_v34  ;;  %v695_v7 = vmul.f32 %v1592_v47, %v631_v61  ;;  %v1246_v61 = vand.u32 2147483648, %v2490_v50 }
 0x236   :  { %v715_v25 = vpop.xlane.xlu2 %714  ;;  %v2551_v19 = vpop.eup %1595  ;;  %v1236_v38 = vmul.f32 %v2537_v17, %v2490_v50 }
 0x237   :  { %v1150_v33 = vsub.f32 %v1118_v62, %v1134_v5  ;;  %v742_v43 = vadd.f32 %v715_v25, %v694_v45  ;;  %v731_v4 = vpop.xlane.xlu0 %730  ;;  %v2556_v58 = vpop.eup %1597  ;;  %v1216_v5 = vand.u32 2147483648, %v2500_v8  ;;  %v1192_v45 = vsub.f32 1.0, %v1191_v32 }
 0x238   :  { %v1030_v13 = vld [vmem:[#allocation3] sm:$0xff]  ;;  %v750_v41 = vadd.f32 %v731_v4, %v702_v1  ;;  %v717_v15 = vpop.xlane.xlu1 %716  ;;  %v2562_v22 = vpop.eup %1599  ;;  %v1323_v62 = vsel %vm2541_vm8, %v1322_v44, %v1318_v42  ;;  %v1267_v25 = vsub.f32 1.0, %v1266_v30  ;;  %v1291_v4 = vand.u32 2147483648, %v2504_v57 }
 0x239   :  { %v1166_v34 = vsub.f32 0.0, %v1150_v33  ;;  %1603 = vlog2.f32 %v1030_v13  ;;  %759 = vst.msk [vmem:[#allocation3 + $0x20] sm:$0xff] %vm37_vm5, %v742_v43  ;;  %v743_v14 = vadd.f32 %v717_v15, %v695_v7  ;;  %v1602_v47 = vpop.eup %1601  ;;  %v2577_v33 = vor.u32 1.1754944e-38, %v1276_v48 }
 0x23a   :  { %767 = vst.msk [vmem:[#allocation3 + $0x60] sm:$0xff] %vm37_vm5, %v750_v41  ;;  %1605 = vpow2.f32 %v676_v53  ;;  %v1237_v43 = vsub.f32 1.0, %v1236_v38  ;;  %v2581_v32 = vmax.f32 %v2567_v16, 1.0  ;;  %v1206_v59 = vmul.f32 %v2551_v19, %v2500_v8 }
 0x23b   :  { %v1324_v23 = vmul.f32 %v1323_v62, %v1166_v34  ;;  %760 = vst.msk [vmem:[#allocation3 + $0x28] sm:$0xff] %vm37_vm5, %v743_v14  ;;  %v1251_v30 = vmul.f32 %v2562_v22, %v2511_v56  ;;  %v691_v42 = vmul.f32 %v1602_v47, %v627_v51  ;;  %v2587_v53 = vor.u32 1.1754944e-38, %v1246_v61 }
 0x23c   :  { %v2590_v48 = vor.u32 1.1754944e-38, %v1216_v5  ;;  %v1193_v38 = vmul.f32 %v2518_v35, %v1192_v45  ;;  %v2594_v15 = vmul.f32 %v2506_v63, %v1267_v25  ;;  %v1281_v34 = vmul.f32 %v2556_v58, %v2504_v57 }
 0x23d   :  { %v1438_v44 = vmul.f32 0.0, %v1324_v23  ;;  %v2603_v61 = vor.u32 1.1754944e-38, %v1291_v4  ;;  %1607 = vrcp.f32 %v2581_v32  ;;  %v3202_v5 = vsub.f32 %v2280_v27, %v2288_v46  ;;  %v635_v4 = vld [vmem:[#allocation3 + $0x48] sm:$0xff] }
 0x23e   :  { %v709_v13 = vpop.xlane.xlu2 %708  ;;  %v1238_v23 = vmul.f32 %v2537_v17, %v1237_v43  ;;  %v1207_v1 = vsub.f32 1.0, %v1206_v59  ;;  %v1194_v27 = vadd.f32 %v2518_v35, %v1193_v38  ;;  %vm1211_vm15 = vweird.f32 %v2551_v19 }
 0x23f   :  { %v1604_v41 = vpop.eup %1603  ;;  %1454 = vst.msk [vmem:[%s3176_s4 + $0x40] sm:$0xff] %vm37_vm5, %v1438_v44  ;;  %v739_v47 = vadd.f32 %v709_v13, %v691_v42  ;;  %v684_v45 = vmul.f32 1.442695, %v3202_v5  ;;  %v1252_v44 = vsub.f32 1.0, %v1251_v30  ;;  %v1014_v42 = vld [vmem:[#allocation2] sm:$0xff]  ;;  %v1282_v43 = vsub.f32 1.0, %v1281_v34  ;;  %vm2708_vm8 = vmor %vm1210_vm14, %vm1211_vm15 }
 0x240   :  { %v1047_v62 = vmul.f32 0.6931472, %v1604_v41  ;;  %v1034_v51 = vld [vmem:[#allocation3 + $0x20] sm:$0xff]  ;;  %v1606_v25 = vpop.eup %1605  ;;  %v1201_v59 = vand.u32 2147483648, %v2474_v28  ;;  %v2620_v30 = vld [vmem:[#allocation5 + $0x58] sm:$0xff]  ;;  %v1208_v5 = vmul.f32 %v2551_v19, %v1207_v1  ;;  %v1261_v34 = vand.u32 2147483648, %v2511_v56 }
 0x241   :  { %1609 = vlog2.f32 %v1034_v51  ;;  %756 = vst.msk [vmem:[#allocation3 + $0x8] sm:$0xff] %vm37_vm5, %v739_v47  ;;  %v1199_v41 = vand.u32 2147483647, %v2474_v28  ;;  %v699_v47 = vmul.f32 %v1606_v25, %v635_v4  ;;  %v1259_v51 = vand.u32 2147483647, %v2511_v56 }
 0x242   :  { %v1078_v46 = vadd.f32 %v1047_v62, %v1014_v42  ;;  %v1035_v13 = vld [vmem:[#allocation3 + $0x28] sm:$0xff]  ;;  %v1253_v62 = vmul.f32 %v2562_v22, %v1252_v44  ;;  %v1198_v25 = vsel %vm2630_vm1, %v2518_v35, %v1194_v27  ;;  %v1283_v6 = vmul.f32 %v2556_v58, %v1282_v43  ;;  %v2662_v42 = vld [vmem:[#allocation5 + $0x38] sm:$0xff] }
 0x243   :  { %1611 = vlog2.f32 %v1035_v13  ;;  %v1110_v13 = vld [vmem:[#allocation4] sm:$0xff]  ;;  %v2644_v14 = vmax.f32 %v2620_v30, 1.0  ;;  %v1202_v7 = vor.u32 1.1754944e-38, %v1201_v59  ;;  %vm1256_vm3 = vweird.f32 %v2562_v22 }
 0x244   :  { %1613 = vpow2.f32 %v684_v45  ;;  %v1126_v38 = vmul.f32 %v2466_v52, %v1078_v46  ;;  %v2634_v45 = vpop.eup %1607  ;;  %v3205_v52 = vsub.f32 %v2307_v2, %v2310_v9  ;;  %v3207_v2 = vand.u32 2147483647, %v2469_v40  ;;  %vm2676_vm0 = vmor %vm1255_vm11, %vm1256_vm3  ;;  %v1111_v9 = vld [vmem:[#allocation4 + $0x8] sm:$0xff] }
 0x245   :  { %vm1200_vm4 = vcmp.eq.f32.partialorder %v1199_v41, 8.507059e+37  ;;  %v1254_v59 = vadd.f32 %v2562_v22, %v1253_v62  ;;  %v2660_v26 = vmul.f32 %v2634_v45, %v2581_v32  ;;  %v2667_v62 = vadd.f32 %v2537_v17, %v1238_v23 }
 0x246   :  { %v725_v28 = vpop.xlane.xlu0 %724  ;;  %v670_v1 = vmul.f32 1.442695, %v3205_v52  ;;  %v1142_v44 = vsub.f32 %v1110_v13, %v1126_v38  ;;  %vm2651_vm2 = vcmp.eq.f32.partialorder %v3207_v2, 8.507059e+37  ;;  %v1203_v54 = vsel %vm1200_vm4, %v1202_v7, %v1198_v25  ;;  %v639_v52 = vld [vmem:[#allocation3 + $0x68] sm:$0xff] }
 0x247   :  { %v747_v4 = vadd.f32 %v725_v28, %v699_v47  ;;  %v1610_v46 = vpop.eup %1609  ;;  %vm2680_vm6 = vcmp.eq.f32.partialorder %v1259_v51, 8.507059e+37  ;;  %v1019_v25 = vld [vmem:[#allocation2 + $0x28] sm:$0xff]  ;;  %v1262_v23 = vor.u32 1.1754944e-38, %v1261_v34  ;;  %v2698_v51 = vadd.f32 %v2556_v58, %v1283_v6 }
 0x248   :  { %v1158_v35 = vsub.f32 0.0, %v1142_v44  ;;  %v1055_v27 = vmul.f32 0.6931472, %v1610_v46  ;;  %v1031_v43 = vld [vmem:[#allocation3 + $0x8] sm:$0xff]  ;;  %v1269_v44 = vadd.f32 %v2506_v63, %v2594_v15  ;;  %v2702_v40 = vmax.f32 %v2662_v42, 1.0  ;;  %v1114_v46 = vld [vmem:[#allocation4 + $0x20] sm:$0xff] }
 0x249   :  { %764 = vst.msk [vmem:[#allocation3 + $0x48] sm:$0xff] %vm37_vm5, %v747_v4  ;;  %v1612_v38 = vpop.eup %1611  ;;  %1615 = vlog2.f32 %v1031_v43  ;;  %v2670_v4 = vadd.f32 %v2551_v19, %v1208_v5  ;;  %v1327_v34 = vsub.f32 1.0, %v2660_v26  ;;  %vm1330_vm10 = vweird.f32 %v2581_v32 }
 0x24a   :  { %v1614_v47 = vpop.eup %1613  ;;  %1617 = vpow2.f32 %v670_v1  ;;  %v1204_v41 = vmul.f32 %v1203_v54, %v1158_v35  ;;  %v1082_v13 = vadd.f32 %v1055_v27, %v1018_v37  ;;  %v1057_v28 = vmul.f32 0.6931472, %v1612_v38  ;;  %v2719_v35 = vld [vmem:[#allocation5 + $0x70] sm:$0xff] }
 0x24b   :  { %1619 = vpow2.f32 %v662_v31  ;;  %v703_v2 = vmul.f32 %v1614_v47, %v639_v52  ;;  %v1258_v27 = vsel %vm2676_vm0, %v2562_v22, %v1254_v59  ;;  %v1115_v47 = vld [vmem:[#allocation4 + $0x28] sm:$0xff]  ;;  %vm1285_vm11 = vweird.f32 %v2504_v57 }
 0x24c   :  { %1446 = vst.msk [vmem:[%s3176_s4] sm:$0xff] %vm37_vm5, %v1204_v41  ;;  %v1130_v56 = vmul.f32 %v2497_v60, %v1082_v13  ;;  %v1083_v5 = vadd.f32 %v1057_v28, %v1019_v25  ;;  %1621 = vrcp.f32 %v2644_v14  ;;  %v3218_v60 = vand.u32 2147483647, %v2500_v8 }
 0x24d   :  { %v3221_v8 = vsub.f32 %v2320_v29, %v2325_v10  ;;  %v3222_v13 = vsub.f32 %v2322_v49, %v2329_v12  ;;  %v1273_v28 = vsel %vm2688_vm7, %v2506_v63, %v1269_v44  ;;  %v1015_v29 = vld [vmem:[#allocation2 + $0x8] sm:$0xff]  ;;  %v1263_v49 = vsel %vm2680_vm6, %v1262_v23, %v1258_v27  ;;  %v2748_v44 = vld [vmem:[#allocation5 + $0x60] sm:$0xff] }
 0x24e   :  { %vm2714_vm9 = vcmp.eq.f32.partialorder %v3218_v60, 8.507059e+37  ;;  %v1146_v43 = vsub.f32 %v1114_v46, %v1130_v56  ;;  %v1131_v38 = vmul.f32 %v2460_v24, %v1083_v5  ;;  %v733_v37 = vpop.xlane.xlu2 %732  ;;  %v632_v56 = vld [vmem:[#allocation3 + $0x30] sm:$0xff]  ;;  %v1213_v10 = vsel %vm2708_vm8, %v2551_v19, %v2670_v4 }
 0x24f   :  { %v1616_v54 = vpop.eup %1615  ;;  %v678_v41 = vmul.f32 1.442695, %v3221_v8  ;;  %v686_v26 = vmul.f32 1.442695, %v3222_v13  ;;  %v751_v22 = vadd.f32 %v733_v37, %v703_v2  ;;  %vm1286_vm12 = vweird.f32 %v2556_v58  ;;  %v628_v5 = vld [vmem:[#allocation3 + $0x10] sm:$0xff] }
 0x250   :  { %v1039_v52 = vld [vmem:[#allocation3 + $0x48] sm:$0xff]  ;;  %v1618_v59 = vpop.eup %1617  ;;  %v1162_v7 = vsub.f32 0.0, %v1146_v43  ;;  %v1147_v24 = vsub.f32 %v1115_v47, %v1131_v38  ;;  %v1049_v25 = vmul.f32 0.6931472, %v1616_v54  ;;  %v2746_v63 = vmax.f32 %v2719_v35, 1.0  ;;  %v2753_v4 = vld [vmem:[#allocation5 + $0x50] sm:$0xff]  ;;  %vm2839_vm0 = vmor %vm1285_vm11, %vm1286_vm12 }
 0x251   :  { %1623 = vlog2.f32 %v1039_v52  ;;  %768 = vst.msk [vmem:[#allocation3 + $0x68] sm:$0xff] %vm37_vm5, %v751_v22  ;;  %v1620_v12 = vpop.eup %1619  ;;  %v1328_v19 = vmul.f32 %v2634_v45, %v1327_v34  ;;  %v1278_v2 = vsel %vm2651_vm2, %v2577_v33, %v1273_v28  ;;  %v696_v31 = vmul.f32 %v1618_v59, %v632_v56 }
 0x252   :  { %1625 = vrcp.f32 %v2702_v40  ;;  %v1264_v15 = vmul.f32 %v1263_v49, %v1162_v7  ;;  %v1163_v1 = vsub.f32 0.0, %v1147_v24  ;;  %v1079_v23 = vadd.f32 %v1049_v25, %v1015_v29  ;;  %v2750_v46 = vpop.eup %1621  ;;  %v2789_v29 = vld [vmem:[#allocation5 + $0x78] sm:$0xff]  ;;  %v1023_v49 = vld [vmem:[#allocation2 + $0x48] sm:$0xff] }
 0x253   :  { %1627 = vpow2.f32 %v678_v41  ;;  %vm1225_vm14 = vweird.f32 %v2455_v36  ;;  %vm1226_vm15 = vweird.f32 %v2479_v20  ;;  %vm1241_vm1 = vweird.f32 %v2537_v17 }
 0x254   :  { %1629 = vpow2.f32 %v686_v26  ;;  %v1434_v60 = vmul.f32 0.0, %v1264_v15  ;;  %v1279_v27 = vmul.f32 %v1278_v2, %v1163_v1  ;;  %v1127_v43 = vmul.f32 %v2485_v3, %v1079_v23  ;;  %v2799_v23 = vld [vmem:[#allocation5 + $0x68] sm:$0xff] }
 0x255   :  { %v1334_v34 = vand.u32 2147483647, %v2581_v32  ;;  %v1336_v38 = vand.u32 2147483648, %v2581_v32  ;;  %v2766_v33 = vmax.f32 %v2748_v44, 1.0  ;;  %v692_v54 = vmul.f32 %v1620_v12, %v628_v5  ;;  %v3227_v12 = vld [vmem:[#allocation13_spill] sm:$0xff]  ;;  %v3229_v5 = vld [vmem:[#allocation10_spill] sm:$0xff] }
 0x256   :  { %v719_v37 = vpop.xlane.xlu0 %718  ;;  %v2769_v8 = vmax.f32 %v2753_v4, 1.0  ;;  %1450 = vst.msk [vmem:[%s3176_s4 + $0x20] sm:$0xff] %vm37_vm5, %v1434_v60  ;;  %v1435_v3 = vmul.f32 0.0, %v1279_v27  ;;  %v1143_v41 = vsub.f32 %v1111_v9, %v1127_v43  ;;  %1631 = vrcp.f32 %v2746_v63 }
 0x257   :  { %v1624_v47 = vpop.eup %1623  ;;  %v744_v13 = vadd.f32 %v719_v37, %v696_v31  ;;  %v711_v26 = vpop.xlane.xlu1 %710  ;;  %v3223_v52 = vsub.f32 %v2343_v39, %v2351_v55  ;;  %v3224_v24 = vand.u32 2147483647, %v2504_v57  ;;  %v1329_v56 = vadd.f32 %v2634_v45, %v1328_v19  ;;  %v3230_v19 = vld [vmem:[#allocation12_spill] sm:$0xff] }
 0x258   :  { %v2775_v28 = vpop.eup %1625  ;;  %v1065_v59 = vmul.f32 0.6931472, %v1624_v47  ;;  %v740_v7 = vadd.f32 %v711_v26, %v692_v54  ;;  %vm1331_vm3 = vweird.f32 %v2634_v45  ;;  %v3228_v15 = vsub.f32 %v2373_v21, %v3227_v12  ;;  %1451 = vst.msk [vmem:[%s3176_s4 + $0x28] sm:$0xff] %vm37_vm5, %v1435_v3  ;;  %v636_v54 = vld [vmem:[#allocation3 + $0x50] sm:$0xff] }
 0x259   :  { %v672_v22 = vmul.f32 1.442695, %v3223_v52  ;;  %vm2783_vm2 = vcmp.eq.f32.partialorder %v3224_v24, 8.507059e+37  ;;  %v1159_v39 = vsub.f32 0.0, %v1143_v41  ;;  %v1628_v1 = vpop.eup %1627  ;;  %1633 = vrcp.f32 %v2766_v33  ;;  %761 = vst.msk [vmem:[#allocation3 + $0x30] sm:$0xff] %vm37_vm5, %v744_v13  ;;  %v640_v47 = vld [vmem:[#allocation3 + $0x70] sm:$0xff]  ;;  %vm2817_vm4 = vmor %vm1330_vm10, %vm1331_vm3 }
 0x25a   :  { %v680_v55 = vmul.f32 1.442695, %v3228_v15  ;;  %v3231_v2 = vsub.f32 %v3229_v5, %v3230_v19  ;;  %v1218_v21 = vsel %vm2714_vm9, %v2590_v48, %v1213_v10  ;;  %v1087_v60 = vadd.f32 %v1065_v59, %v1023_v49  ;;  %v1630_v27 = vpop.eup %1629  ;;  %757 = vst.msk [vmem:[#allocation3 + $0x10] sm:$0xff] %vm37_vm5, %v740_v7  ;;  %v1119_v13 = vld [vmem:[#allocation4 + $0x48] sm:$0xff]  ;;  %vm2870_vm9 = vmor %vm1225_vm14, %vm1226_vm15 }
 0x25b   :  { %v1356_v43 = vmul.f32 %v2750_v46, %v2644_v14  ;;  %v1306_v9 = vand.u32 2147483648, %v2702_v40  ;;  %1635 = vrcp.f32 %v2769_v8  ;;  %v1219_v37 = vmul.f32 %v1218_v21, %v1159_v39  ;;  %vm2881_vm10 = vmor %vm1240_vm13, %vm1241_vm1 }
 0x25c   :  { %v664_v31 = vmul.f32 1.442695, %v3231_v2  ;;  %v1296_v6 = vmul.f32 %v2775_v28, %v2702_v40  ;;  %v2824_v10 = vmax.f32 %v2789_v29, 1.0  ;;  %1637 = vpow2.f32 %v672_v22  ;;  %v2833_v52 = vpop.eup %1631 }
 0x25d   :  { %v1135_v3 = vmul.f32 %v2567_v16, %v1087_v60  ;;  %v2828_v41 = vmax.f32 %v2799_v23, 1.0  ;;  %1639 = vpow2.f32 %v680_v55  ;;  %v1431_v26 = vmul.f32 0.0, %v1219_v37 }
 0x25e   :  { %v1333_v32 = vsel %vm2817_vm4, %v2634_v45, %v1329_v56  ;;  %1641 = vpow2.f32 %v664_v31  ;;  %v700_v59 = vmul.f32 %v1628_v1, %v636_v54  ;;  %v704_v7 = vmul.f32 %v1630_v27, %v640_v47  ;;  %v727_v39 = vpop.xlane.xlu2 %726  ;;  %v3248_v54 = vld [vmem:[#allocation9_spill] sm:$0xff]  ;;  %v3249_v47 = vld [vmem:[#allocation11_spill] sm:$0xff] }
 0x25f   :  { %v1151_v16 = vsub.f32 %v1119_v13, %v1135_v3  ;;  %v3236_v24 = vand.u32 2147483647, %v2455_v36  ;;  %v3239_v45 = vand.u32 2147483647, %v2490_v50  ;;  %v1357_v57 = vsub.f32 1.0, %v1356_v43  ;;  %1447 = vst.msk [vmem:[%s3176_s4 + $0x8] sm:$0xff] %vm37_vm5, %v1431_v26  ;;  %v735_v1 = vpop.xlane.xlu1 %734  ;;  %v2864_v5 = vpop.eup %1633 }
 0x260   :  { %vm2855_vm8 = vcmp.eq.f32.partialorder %v1334_v34, 8.507059e+37  ;;  %v1337_v15 = vor.u32 1.1754944e-38, %v1336_v38  ;;  %v1304_v55 = vand.u32 2147483647, %v2702_v40  ;;  %1643 = vrcp.f32 %v2824_v10  ;;  %v1036_v43 = vld [vmem:[#allocation3 + $0x30] sm:$0xff] }
 0x261   :  { %vm2845_vm6 = vcmp.eq.f32.partialorder %v3236_v24, 8.507059e+37  ;;  %vm2851_vm7 = vcmp.eq.f32.partialorder %v3239_v45, 8.507059e+37  ;;  %v1167_v38 = vsub.f32 0.0, %v1151_v16  ;;  %v748_v19 = vadd.f32 %v727_v39, %v700_v59  ;;  %v2875_v31 = vpop.eup %1635  ;;  %v1032_v13 = vld [vmem:[#allocation3 + $0x10] sm:$0xff]  ;;  %v629_v24 = vld [vmem:[#allocation3 + $0x18] sm:$0xff] }
 0x262   :  { %v752_v2 = vadd.f32 %v735_v1, %v704_v7  ;;  %v1297_v36 = vsub.f32 1.0, %v1296_v6  ;;  %vm1300_vm11 = vweird.f32 %v2702_v40  ;;  %1645 = vrcp.f32 %v2828_v41  ;;  %v1638_v37 = vpop.eup %1637  ;;  %v3259_v40 = vld [vmem:[#allocation14_spill] sm:$0xff] }
 0x263   :  { %v1338_v60 = vsel %vm2855_vm8, %v1337_v15, %v1333_v32  ;;  %v1288_v27 = vsel %vm2839_vm0, %v2556_v58, %v2698_v51  ;;  %v2893_v50 = vor.u32 1.1754944e-38, %v1306_v9  ;;  %v3250_v48 = vsub.f32 %v3248_v54, %v3249_v47  ;;  %765 = vst.msk [vmem:[#allocation3 + $0x50] sm:$0xff] %vm37_vm5, %v748_v19  ;;  %v1640_v26 = vpop.eup %1639  ;;  %v633_v51 = vld [vmem:[#allocation3 + $0x38] sm:$0xff] }
 0x264   :  { %v1339_v3 = vmul.f32 %v1338_v60, %v1167_v38  ;;  %1647 = vlog2.f32 %v1036_v43  ;;  %vm1301_vm12 = vweird.f32 %v2775_v28  ;;  %v1228_v58 = vsel %vm2870_vm9, %v2479_v20, %v2565_v11  ;;  %769 = vst.msk [vmem:[#allocation3 + $0x70] sm:$0xff] %vm37_vm5, %v752_v2  ;;  %v637_v9 = vld [vmem:[#allocation3 + $0x58] sm:$0xff]  ;;  %v1642_v22 = vpop.eup %1641 }
 0x265   :  { %v688_v6 = vmul.f32 1.442695, %v3250_v48  ;;  %1649 = vlog2.f32 %v1032_v13  ;;  %v1358_v32 = vmul.f32 %v2750_v46, %v1357_v57  ;;  %v1371_v16 = vmul.f32 %v2864_v5, %v2766_v33  ;;  %v1042_v57 = vld [vmem:[#allocation3 + $0x60] sm:$0xff] }
 0x266   :  { %v1439_v59 = vmul.f32 0.0, %v1339_v3  ;;  %v2911_v7 = vsel %vm2783_vm2, %v2603_v61, %v1288_v27  ;;  %v1243_v20 = vsel %vm2881_vm10, %v2537_v17, %v2667_v62  ;;  %v1298_v11 = vmul.f32 %v2775_v28, %v1297_v36  ;;  %v2924_v25 = vpop.eup %1643  ;;  %v721_v39 = vpop.xlane.xlu2 %720  ;;  %v1020_v3 = vld [vmem:[#allocation2 + $0x30] sm:$0xff]  ;;  %vm2981_vm2 = vmor %vm1300_vm11, %vm1301_vm12 }
 0x267   :  { %v2920_v45 = vmul.f32 %v2833_v52, %v2746_v63  ;;  %vm1360_vm14 = vweird.f32 %v2644_v14  ;;  %vm1361_vm15 = vweird.f32 %v2750_v46  ;;  %1651 = vpow2.f32 %v688_v6  ;;  %v729_v1 = vpop.xlane.xlu1 %728  ;;  %v713_v27 = vpop.xlane.xlu0 %712 }
 0x268   :  { %1455 = vst.msk [vmem:[%s3176_s4 + $0x48] sm:$0xff] %vm37_vm5, %v1439_v59  ;;  %v697_v17 = vmul.f32 %v1638_v37, %v633_v51  ;;  %v701_v61 = vmul.f32 %v1640_v26, %v637_v9  ;;  %v1364_v62 = vand.u32 2147483647, %v2644_v14  ;;  %v2931_v12 = vpop.eup %1645  ;;  %v2935_v15 = vmul.f32 %v2875_v31, %v2769_v8  ;;  %vm2964_vm13 = vmor %vm1360_vm14, %vm1361_vm15 }
 0x269   :  { %v693_v34 = vmul.f32 %v1642_v22, %v629_v24  ;;  %v2938_v38 = vadd.f32 %v2750_v46, %v1358_v32  ;;  %v1366_v19 = vand.u32 2147483648, %v2644_v14  ;;  %v1372_v21 = vsub.f32 1.0, %v1371_v16  ;;  %v1016_v32 = vld [vmem:[#allocation2 + $0x10] sm:$0xff] }
 0x26a   :  { %v1648_v2 = vpop.eup %1647  ;;  %1653 = vlog2.f32 %v1042_v57  ;;  %v745_v36 = vadd.f32 %v721_v39, %v697_v17  ;;  %v749_v60 = vadd.f32 %v729_v1, %v701_v61  ;;  %v2942_v37 = vadd.f32 %v2775_v28, %v1298_v11  ;;  %v798_v61 = vld [vmem:[#allocation4 + $0x58] sm:$0xff]  ;;  %v1116_v1 = vld [vmem:[#allocation4 + $0x30] sm:$0xff] }
 0x26b   :  { %v1650_v43 = vpop.eup %1649  ;;  %v2946_v54 = vmul.f32 %v2924_v25, %v2824_v10  ;;  %v1059_v47 = vmul.f32 0.6931472, %v1648_v2  ;;  %v741_v48 = vadd.f32 %v713_v27, %v693_v34  ;;  %v1402_v6 = vsub.f32 1.0, %v2920_v45  ;;  %v1044_v59 = vld [vmem:[#allocation3 + $0x70] sm:$0xff] }
 0x26c   :  { %v2952_v13 = vsel %vm2845_vm6, %v2535_v18, %v1228_v58  ;;  %v1051_v26 = vmul.f32 0.6931472, %v1650_v43  ;;  %762 = vst.msk [vmem:[#allocation3 + $0x38] sm:$0xff] %vm37_vm5, %v745_v36  ;;  %v2958_v51 = vsel %vm2851_vm7, %v2587_v53, %v1243_v20  ;;  %v1363_v18 = vsel %vm2964_vm13, %v2750_v46, %v2938_v38  ;;  %v641_v20 = vld [vmem:[#allocation3 + $0x78] sm:$0xff]  ;;  %v1040_v34 = vld [vmem:[#allocation3 + $0x50] sm:$0xff] }
 0x26d   :  { %v1084_v49 = vadd.f32 %v1059_v47, %v1020_v3  ;;  %766 = vst.msk [vmem:[#allocation3 + $0x58] sm:$0xff] %vm37_vm5, %v749_v60  ;;  %vm2973_vm1 = vcmp.eq.f32.partialorder %v1364_v62, 8.507059e+37  ;;  %v1367_v56 = vor.u32 1.1754944e-38, %v1366_v19  ;;  %v1652_v58 = vpop.eup %1651  ;;  %v1342_v22 = vsub.f32 1.0, %v2935_v15  ;;  %v799_v62 = vld [vmem:[#allocation4 + $0x60] sm:$0xff]  ;;  %v1112_v19 = vld [vmem:[#allocation4 + $0x10] sm:$0xff] }
 0x26e   :  { %v2988_v16 = vmul.f32 %v2931_v12, %v2828_v41  ;;  %v1080_v46 = vadd.f32 %v1051_v26, %v1016_v32  ;;  %758 = vst.msk [vmem:[#allocation3 + $0x18] sm:$0xff] %vm37_vm5, %v741_v48  ;;  %v1373_v24 = vmul.f32 %v2864_v5, %v1372_v21  ;;  %vm2994_vm3 = vcmp.eq.f32.partialorder %v1304_v55, 8.507059e+37  ;;  %v842_v21 = vpop.xlane.xlu2 %841  ;;  %v801_v53 = vld [vmem:[#allocation4 + $0x70] sm:$0xff] }
 0x26f   :  { %v1417_v45 = vsub.f32 1.0, %v2946_v54  ;;  %v1132_v57 = vmul.f32 %v2492_v0, %v1084_v49  ;;  %v1303_v17 = vsel %vm2981_vm2, %v2775_v28, %v2942_v37  ;;  %vm1375_vm4 = vweird.f32 %v2766_v33  ;;  %v844_v28 = vpop.xlane.xlu1 %843  ;;  %v737_v48 = vpop.xlane.xlu0 %736  ;;  %v1024_v15 = vld [vmem:[#allocation2 + $0x50] sm:$0xff] }
 0x270   :  { %v1654_v39 = vpop.eup %1653  ;;  %v1128_v55 = vmul.f32 %v3259_v40, %v1080_v46  ;;  %vm1376_vm0 = vweird.f32 %v2864_v5  ;;  %v1379_v38 = vand.u32 2147483647, %v2766_v33  ;;  %v1381_v0 = vand.u32 2147483648, %v2766_v33 }
 0x271   :  { %v1148_v2 = vsub.f32 %v1116_v1, %v1132_v57  ;;  %1655 = vlog2.f32 %v1044_v59  ;;  %v705_v36 = vmul.f32 %v1652_v58, %v641_v20  ;;  %v1403_v60 = vmul.f32 %v2833_v52, %v1402_v6  ;;  %v1026_v57 = vld [vmem:[#allocation2 + $0x60] sm:$0xff]  ;;  %vm3028_vm7 = vmor %vm1375_vm4, %vm1376_vm0 }
 0x272   :  { %v1144_v27 = vsub.f32 %v1112_v19, %v1128_v55  ;;  %v862_v43 = vadd.f32 %v842_v21, %v798_v61  ;;  %v1374_v37 = vadd.f32 %v2864_v5, %v1373_v24  ;;  %v863_v47 = vadd.f32 %v844_v28, %v799_v62 }
 0x273   :  { %v1071_v3 = vmul.f32 0.6931472, %v1654_v39  ;;  %v1164_v26 = vsub.f32 0.0, %v1148_v2  ;;  %1657 = vlog2.f32 %v1040_v34  ;;  %v1037_v9 = vld [vmem:[#allocation3 + $0x38] sm:$0xff]  ;;  %v753_v32 = vadd.f32 %v737_v48, %v705_v36 }
 0x274   :  { %v1160_v49 = vsub.f32 0.0, %v1144_v27  ;;  %1659 = vlog2.f32 %v1037_v9  ;;  %v1041_v14 = vld [vmem:[#allocation3 + $0x58] sm:$0xff]  ;;  %878 = vst.msk [vmem:[#allocation4 + $0x58] sm:$0xff] %vm37_vm5, %v862_v43  ;;  %vm1406_vm6 = vweird.f32 %v2833_v52  ;;  %v1409_v6 = vand.u32 2147483647, %v2746_v63 }
 0x275   :  { %v1294_v58 = vmul.f32 %v2911_v7, %v1164_v26  ;;  %1661 = vlog2.f32 %v1041_v14  ;;  %v1033_v46 = vld [vmem:[#allocation3 + $0x18] sm:$0xff]  ;;  %879 = vst.msk [vmem:[#allocation4 + $0x60] sm:$0xff] %vm37_vm5, %v863_v47  ;;  %v1404_v59 = vadd.f32 %v2833_v52, %v1403_v60  ;;  %v1411_v24 = vand.u32 2147483648, %v2746_v63  ;;  %v1028_v14 = vld [vmem:[#allocation2 + $0x70] sm:$0xff] }
 0x276   :  { %v1387_v20 = vsub.f32 1.0, %v2988_v16  ;;  %v1234_v61 = vmul.f32 %v2952_v13, %v1160_v49  ;;  %1663 = vlog2.f32 %v1033_v46  ;;  %v3022_v62 = vsel %vm2973_vm1, %v1367_v56, %v1363_v18  ;;  %770 = vst.msk [vmem:[#allocation3 + $0x78] sm:$0xff] %vm37_vm5, %v753_v32  ;;  %v802_v18 = vld [vmem:[#allocation4 + $0x78] sm:$0xff]  ;;  %v1043_v56 = vld [vmem:[#allocation3 + $0x68] sm:$0xff] }
 0x277   :  { %v1656_v39 = vpop.eup %1655  ;;  %v1436_v1 = vmul.f32 0.0, %v1294_v58  ;;  %v1090_v40 = vadd.f32 %v1071_v3, %v1026_v57  ;;  %v1378_v13 = vsel %vm3028_vm7, %v2864_v5, %v1374_v37  ;;  %vm1405_vm8 = vweird.f32 %v2746_v63  ;;  %v797_v5 = vld [vmem:[#allocation4 + $0x50] sm:$0xff]  ;;  %v840_v27 = vpop.xlane.xlu0 %839  ;;  %v1021_v37 = vld [vmem:[#allocation2 + $0x38] sm:$0xff] }
 0x278   :  { %v1432_v55 = vmul.f32 0.0, %v1234_v61  ;;  %v3040_v33 = vsel %vm2994_vm3, %v2893_v50, %v1303_v17  ;;  %vm1380_vm9 = vcmp.eq.f32.partialorder %v1379_v38, 8.507059e+37  ;;  %v1382_v34 = vor.u32 1.1754944e-38, %v1381_v0  ;;  %vm3044_vm10 = vmor %vm1405_vm8, %vm1406_vm6  ;;  %v848_v17 = vpop.xlane.xlu2 %847  ;;  %v850_v0 = vpop.xlane.xlu1 %849  ;;  %v1017_v57 = vld [vmem:[#allocation2 + $0x18] sm:$0xff] }
 0x279   :  { %v1658_v2 = vpop.eup %1657  ;;  %1452 = vst.msk [vmem:[%s3176_s4 + $0x30] sm:$0xff] %vm37_vm5, %v1436_v1  ;;  %v1408_v63 = vsel %vm3044_vm10, %v2833_v52, %v1404_v59  ;;  %vm3055_vm11 = vcmp.eq.f32.partialorder %v1409_v6, 8.507059e+37  ;;  %v1412_v11 = vor.u32 1.1754944e-38, %v1411_v24  ;;  %v1418_v38 = vmul.f32 %v2924_v25, %v1417_v45  ;;  %v1025_v6 = vld [vmem:[#allocation2 + $0x58] sm:$0xff] }
 0x27a   :  { %v1660_v21 = vpop.eup %1659  ;;  %1448 = vst.msk [vmem:[%s3176_s4 + $0x10] sm:$0xff] %vm37_vm5, %v1432_v55  ;;  %v1075_v28 = vmul.f32 0.6931472, %v1656_v39  ;;  %v1383_v36 = vsel %vm1380_vm9, %v1382_v34, %v1378_v13  ;;  %v865_v52 = vadd.f32 %v848_v17, %v801_v53  ;;  %v866_v60 = vadd.f32 %v850_v0, %v802_v18  ;;  %v1117_v13 = vld [vmem:[#allocation4 + $0x38] sm:$0xff]  ;;  %v800_v55 = vld [vmem:[#allocation4 + $0x68] sm:$0xff] }
 0x27b   :  { %v1662_v43 = vpop.eup %1661  ;;  %1665 = vlog2.f32 %v1043_v56  ;;  %v1061_v47 = vmul.f32 0.6931472, %v1660_v21  ;;  %v1138_v54 = vmul.f32 %v2748_v44, %v1090_v40  ;;  %v861_v48 = vadd.f32 %v840_v27, %v797_v5  ;;  %v1669_v5 = vld [vmem:[#allocation5 + $0x18] sm:$0xff] }
 0x27c   :  { %v1664_v45 = vpop.eup %1663  ;;  %v1067_v3 = vmul.f32 0.6931472, %v1658_v2  ;;  %v1069_v26 = vmul.f32 0.6931472, %v1662_v43  ;;  %v1122_v9 = vld [vmem:[#allocation4 + $0x60] sm:$0xff]  ;;  %v3069_v32 = vsel %vm3055_vm11, %v1412_v11, %v1408_v63  ;;  %881 = vst.msk [vmem:[#allocation4 + $0x70] sm:$0xff] %vm37_vm5, %v865_v52  ;;  %v1343_v49 = vmul.f32 %v2875_v31, %v1342_v22 }
 0x27d   :  { %v1085_v58 = vadd.f32 %v1061_v47, %v1021_v37  ;;  %v1053_v46 = vmul.f32 0.6931472, %v1664_v45  ;;  %v1154_v44 = vsub.f32 %v1122_v9, %v1138_v54  ;;  %v1045_v59 = vld [vmem:[#allocation3 + $0x78] sm:$0xff]  ;;  %v3076_v24 = vadd.f32 %v2924_v25, %v1418_v38  ;;  %882 = vst.msk [vmem:[#allocation4 + $0x78] sm:$0xff] %vm37_vm5, %v866_v60 }
 0x27e   :  { %v1089_v61 = vadd.f32 %v1069_v26, %v1025_v6  ;;  %1667 = vlog2.f32 %v1045_v59  ;;  %v1092_v7 = vadd.f32 %v1075_v28, %v1028_v14  ;;  %v1426_v39 = vand.u32 2147483648, %v2824_v10  ;;  %877 = vst.msk [vmem:[#allocation4 + $0x50] sm:$0xff] %vm37_vm5, %v861_v48  ;;  %v1113_v11 = vld [vmem:[#allocation4 + $0x18] sm:$0xff]  ;;  %v1027_v14 = vld [vmem:[#allocation2 + $0x68] sm:$0xff] }
 0x27f   :  { %v1133_v22 = vmul.f32 %v2662_v42, %v1085_v58  ;;  %v1081_v1 = vadd.f32 %v1053_v46, %v1017_v57  ;;  %v1170_v40 = vsub.f32 0.0, %v1154_v44  ;;  %vm1421_vm12 = vweird.f32 %v2924_v25  ;;  %v1121_v42 = vld [vmem:[#allocation4 + $0x58] sm:$0xff]  ;;  %v846_v21 = vpop.xlane.xlu0 %845 }
 0x280   :  { %vm1345_vm14 = vweird.f32 %v2769_v8  ;;  %v1137_v53 = vmul.f32 %v2620_v30, %v1089_v61  ;;  %v1088_v18 = vadd.f32 %v1067_v3, %v1024_v15  ;;  %v1344_v56 = vadd.f32 %v2875_v31, %v1343_v49  ;;  %v1029_v26 = vld [vmem:[#allocation2 + $0x78] sm:$0xff] }
 0x281   :  { %vm1346_vm15 = vweird.f32 %v2875_v31  ;;  %v1666_v34 = vpop.eup %1665  ;;  %v1149_v19 = vsub.f32 %v1117_v13, %v1133_v22  ;;  %v1129_v2 = vmul.f32 %v1669_v5, %v1081_v1  ;;  %v1384_v63 = vmul.f32 %v1383_v36, %v1170_v40 }
 0x282   :  { %vm1420_vm13 = vweird.f32 %v2824_v10  ;;  %v1349_v50 = vand.u32 2147483647, %v2769_v8  ;;  %v1153_v17 = vsub.f32 %v1121_v42, %v1137_v53  ;;  %v1140_v30 = vmul.f32 %v2719_v35, %v1092_v7  ;;  %vm3099_vm1 = vmor %vm1345_vm14, %vm1346_vm15 }
 0x283   :  { %v1351_v38 = vand.u32 2147483648, %v2769_v8  ;;  %v1388_v0 = vmul.f32 %v2931_v12, %v1387_v20  ;;  %v1165_v28 = vsub.f32 0.0, %v1149_v19  ;;  %v1145_v52 = vsub.f32 %v1113_v11, %v1129_v2  ;;  %v1124_v27 = vld [vmem:[#allocation4 + $0x70] sm:$0xff]  ;;  %vm3135_vm3 = vmor %vm1420_vm13, %vm1421_vm12 }
 0x284   :  { %v1442_v60 = vmul.f32 0.0, %v1384_v63  ;;  %v864_v36 = vadd.f32 %v846_v21, %v800_v55  ;;  %v1668_v43 = vpop.eup %1667  ;;  %v1073_v37 = vmul.f32 0.6931472, %v1666_v34  ;;  %v1169_v47 = vsub.f32 0.0, %v1153_v17 }
 0x285   :  { %v1156_v54 = vsub.f32 %v1124_v27, %v1140_v30  ;;  %v1136_v48 = vmul.f32 %v2753_v4, %v1088_v18  ;;  %v1309_v16 = vmul.f32 %v3040_v33, %v1165_v28  ;;  %v1161_v20 = vsub.f32 0.0, %v1145_v52  ;;  %v1120_v3 = vld [vmem:[#allocation4 + $0x50] sm:$0xff] }
 0x286   :  { %1458 = vst.msk [vmem:[%s3176_s4 + $0x60] sm:$0xff] %vm37_vm5, %v1442_v60  ;;  %v1077_v45 = vmul.f32 0.6931472, %v1668_v43  ;;  %v1348_v4 = vsel %vm3099_vm1, %v2875_v31, %v1344_v56  ;;  %v1369_v8 = vmul.f32 %v3022_v62, %v1169_v47  ;;  %vm3112_vm2 = vcmp.eq.f32.partialorder %v1349_v50, 8.507059e+37 }
 0x287   :  { %v1172_v9 = vsub.f32 0.0, %v1156_v54  ;;  %v1152_v33 = vsub.f32 %v1120_v3, %v1136_v48  ;;  %880 = vst.msk [vmem:[#allocation4 + $0x68] sm:$0xff] %vm37_vm5, %v864_v36  ;;  %v1437_v6 = vmul.f32 0.0, %v1309_v16  ;;  %v1249_v58 = vmul.f32 %v2958_v51, %v1161_v20 }
 0x288   :  { %v1093_v46 = vadd.f32 %v1077_v45, %v1029_v26  ;;  %v1352_v44 = vor.u32 1.1754944e-38, %v1351_v38  ;;  %v1441_v59 = vmul.f32 0.0, %v1369_v8  ;;  %v1091_v61 = vadd.f32 %v1073_v37, %v1027_v14 }
 0x289   :  { %v1414_v31 = vmul.f32 %v3069_v32, %v1172_v9  ;;  %v1168_v57 = vsub.f32 0.0, %v1152_v33  ;;  %1453 = vst.msk [vmem:[%s3176_s4 + $0x38] sm:$0xff] %vm37_vm5, %v1437_v6  ;;  %v1433_v62 = vmul.f32 0.0, %v1249_v58  ;;  %v1424_v15 = vand.u32 2147483647, %v2824_v10 }
 0x28a   :  { %v1141_v7 = vmul.f32 %v2789_v29, %v1093_v46  ;;  %v1353_v51 = vsel %vm3112_vm2, %v1352_v44, %v1348_v4  ;;  %1457 = vst.msk [vmem:[%s3176_s4 + $0x58] sm:$0xff] %vm37_vm5, %v1441_v59  ;;  %v1125_v29 = vld [vmem:[#allocation4 + $0x78] sm:$0xff]  ;;  %v1389_v40 = vadd.f32 %v2931_v12, %v1388_v0  ;;  %vm1391_vm4 = vweird.f32 %v2931_v12 }
 0x28b   :  { %v1444_v32 = vmul.f32 0.0, %v1414_v31  ;;  %v1354_v1 = vmul.f32 %v1353_v51, %v1168_v57  ;;  %1449 = vst.msk [vmem:[%s3176_s4 + $0x18] sm:$0xff] %vm37_vm5, %v1433_v62  ;;  %v1423_v13 = vsel %vm3135_vm3, %v2924_v25, %v3076_v24  ;;  %v1427_v53 = vor.u32 1.1754944e-38, %v1426_v39 }
 0x28c   :  { %v1157_v18 = vsub.f32 %v1125_v29, %v1141_v7  ;;  %v1396_v56 = vand.u32 2147483648, %v2828_v41  ;;  %v1139_v34 = vmul.f32 %v2799_v23, %v1091_v61  ;;  %vm1390_vm0 = vweird.f32 %v2828_v41 }
 0x28d   :  { %1460 = vst.msk [vmem:[%s3176_s4 + $0x70] sm:$0xff] %vm37_vm5, %v1444_v32  ;;  %v1440_v55 = vmul.f32 0.0, %v1354_v1  ;;  %v1394_v19 = vand.u32 2147483647, %v2828_v41  ;;  %vm1425_vm6 = vcmp.eq.f32.partialorder %v1424_v15, 8.507059e+37  ;;  %vm1392_vm7 = vmor %vm1390_vm0, %vm1391_vm4 }
 0x28e   :  { %v1173_v25 = vsub.f32 0.0, %v1157_v18  ;;  %v1123_v10 = vld [vmem:[#allocation4 + $0x68] sm:$0xff]  ;;  %v1428_v24 = vsel %vm1425_vm6, %v1427_v53, %v1423_v13  ;;  %v1393_v39 = vsel %vm1392_vm7, %v2931_v12, %v1389_v40  ;;  %v1397_v42 = vor.u32 1.1754944e-38, %v1396_v56 }
 0x28f   :  { %1456 = vst.msk [vmem:[%s3176_s4 + $0x50] sm:$0xff] %vm37_vm5, %v1440_v55  ;;  %v1155_v5 = vsub.f32 %v1123_v10, %v1139_v34  ;;  %vm1395_vm8 = vcmp.eq.f32.partialorder %v1394_v19, 8.507059e+37 }
 0x290   :  { %v1429_v2 = vmul.f32 %v1428_v24, %v1173_v25  ;;  %v1398_v50 = vsel %vm1395_vm8, %v1397_v42, %v1393_v39 }
 0x291   :  { %v1171_v23 = vsub.f32 0.0, %v1155_v5 }
 0x292   :  { %v1445_v63 = vmul.f32 0.0, %v1429_v2 }
 0x293   :  { %v1399_v41 = vmul.f32 %v1398_v50, %v1171_v23 }
 0x294   :  { %1461 = vst.msk [vmem:[%s3176_s4 + $0x78] sm:$0xff] %vm37_vm5, %v1445_v63 }
 0x295   :  { %v1443_v11 = vmul.f32 0.0, %v1399_v41 }
 0x297   :  { %1459 = vst.msk [vmem:[%s3176_s4 + $0x68] sm:$0xff] %vm37_vm5, %v1443_v11 }
 0x298   :  { %1466 = vsyncpa [#allocation7], 1 }

</bundles_post_ra>
